<compile_context>
chip_gen: v7x
topology: tpu7x:2x2x1
jax: 0.10.0
libtpu: 0.0.40
codegen_flags: <defaults>
</compile_context>

<pallas_src>
import jax
import jax.numpy as jnp
from jax.experimental import pallas as pl
from jax.experimental.pallas import tpu as pltpu

# Problem sizes (small, consistent with an NCHW image-pair input).
N, CIN, H, W = 2, 3, 16, 16     # batch (per image set), channels, spatial
K = 3                           # conv kernel size
C1 = 16                         # conv output channels
D = 64                          # identity-embedding dim
HW = H * W                      # 256 pixels per image (multiple of 128)
B2 = 2 * N                      # img + rendered_img processed in one call
NPIX = B2 * HW                  # 1024 pixels total on the lane axis
W_SHIFT = (W - 1).bit_length()  # log2(W) = 4

# 3x3 cross-correlation offsets; order must match conv_w's leading axis.
_OFFSETS = tuple((dy, dx) for dy in (-1, 0, 1) for dx in (-1, 0, 1))


def _perceptual_kernel(img_ref, convw_ref, convb_ref, fcw_ref, fcb_ref,
                       out_ref):
    # img_ref : (CIN, NPIX) bf16 -- pixels flattened (image, h, w)-major on lanes.
    # convw_ref: (9, C1, CIN) bf16, convb_ref: (C1, 1) f32
    # fcw_ref : (C1, D) f32, fcb_ref: (1, D) f32
    # out_ref : (N, 2*D) f32 -- [id_labels | id_features] packed lane-dense.
    img = img_ref[...].astype(jnp.float32)                      # (3, 1024)

    # Per-lane (h, w) coordinates within each image (powers of two -> bit ops).
    idx = jax.lax.broadcasted_iota(jnp.int32, (CIN, NPIX), 1)
    w_pos = jnp.bitwise_and(idx, W - 1)
    h_pos = jnp.bitwise_and(jnp.right_shift(idx, W_SHIFT), H - 1)

    # 3x3 SAME conv: in-kernel im2col as 9 lane rolls (XLU) + boundary masks
    # (VPU) feeding accumulating bf16 MXU matmuls. No patch tensor in HBM.
    feat = None
    for i, (dy, dx) in enumerate(_OFFSETS):
        s = dy * W + dx
        shifted = img if s == 0 else pltpu.roll(img, (-s) % NPIX, axis=1)
        conds = []
        if dy < 0:
            conds.append(h_pos >= -dy)
        if dy > 0:
            conds.append(h_pos < H - dy)
        if dx < 0:
            conds.append(w_pos >= -dx)
        if dx > 0:
            conds.append(w_pos < W - dx)
        if conds:
            valid = conds[0]
            for c in conds[1:]:
                valid = valid & c
            shifted = jnp.where(valid, shifted, 0.0)
        contrib = jnp.dot(convw_ref[i], shifted.astype(jnp.bfloat16),
                          preferred_element_type=jnp.float32)    # (C1, NPIX)
        feat = contrib if feat is None else feat + contrib
    feat = jnp.maximum(feat + convb_ref[...], 0.0)               # (16, 1024) f32

    # Global mean pool per image: 256-lane-aligned slice reductions (XLU);
    # columns combined with lane selects (no pooling matmul, no concat).
    lane_b = jax.lax.broadcasted_iota(jnp.int32, (C1, B2), 1)
    pooled = None
    for b in range(B2):
        col = jnp.sum(feat[:, b * HW:(b + 1) * HW], axis=1, keepdims=True)
        placed = jnp.where(lane_b == b, col, 0.0)                # (C1, B2)
        pooled = placed if pooled is None else pooled + placed
    pooled = pooled * jnp.float32(1.0 / HW)                      # (C1, B2)

    # Batched fully-connected projection + L2 normalization (f32).
    emb = jnp.dot(pooled.T, fcw_ref[...],
                  preferred_element_type=jnp.float32) + fcb_ref[...]  # (B2, D)
    inv = jax.lax.rsqrt(jnp.sum(emb * emb, axis=-1, keepdims=True) + 1e-12)
    emb = emb * inv

    # Direct stores into the lane-dense (2, 128) output (no concatenate).
    out_ref[:, :D] = emb[:N, :]        # id_labels   (from x['img'])
    out_ref[:, D:] = emb[N:, :]        # id_features (from x['rendered_img'])


@jax.jit
def perceptual_pair(img, rendered_img, params):
    """Frozen synthetic Perceptual_Net applied to both images in one call."""
    conv_w, conv_b, fc_w, fc_b = params
    both = jnp.concatenate([img, rendered_img], axis=0)          # (B2, CIN, H, W)
    # Lane-dense, channel-major flattened image (tiny ~6 KB bf16 intermediate).
    img_flat = (jnp.transpose(both, (1, 0, 2, 3))
                .reshape(CIN, NPIX)
                .astype(jnp.bfloat16))                           # (3, 1024)
    packed = pl.pallas_call(
        _perceptual_kernel,
        out_shape=jax.ShapeDtypeStruct((N, 2 * D), jnp.float32),
        # No grid / BlockSpecs: single step, whole arrays resident in VMEM,
        # no double buffering of read-once inputs.
    )(img_flat, conv_w, conv_b, fc_w, fc_b)
    return packed[:, :D], packed[:, D:]                          # (N, D), (N, D)


def init_params():
    # Deterministic synthetic parameters (module is eval-only / frozen).
    k = jax.random.PRNGKey(42)
    k1, k2, k3, k4 = jax.random.split(k, 4)
    conv_w = (jax.random.normal(k1, (K * K, C1, CIN), jnp.float32) * 0.1
              ).astype(jnp.bfloat16)                             # per-offset (C1, CIN)
    conv_b = jax.random.normal(k2, (C1, 1), jnp.float32) * 0.01
    fc_w = jax.random.normal(k3, (C1, D), jnp.float32) * 0.1
    fc_b = jax.random.normal(k4, (1, D), jnp.float32) * 0.01
    return conv_w, conv_b, fc_w, fc_b


def loss_layer_forward(x, params):
    """Mirrors Loss_layer.forward: frozen perceptual net on both images."""
    id_labels, id_features = perceptual_pair(x['img'], x['rendered_img'], params)
    out = dict(x)
    out['id_labels'] = id_labels
    out['id_features'] = id_features
    return out


if __name__ == "__main__":
    key = jax.random.PRNGKey(0)
    k1, k2 = jax.random.split(key)
    img = jax.random.uniform(k1, (N, CIN, H, W), dtype=jnp.float32)
    rendered_img = jax.random.uniform(k2, (N, CIN, H, W), dtype=jnp.float32)
    params = init_params()

    x = {'img': img, 'rendered_img': rendered_img}
    out = loss_layer_forward(x, params)
    jax.block_until_ready(out['id_labels'])
    jax.block_until_ready(out['id_features'])

    assert out['id_labels'].shape == (N, D)
    assert out['id_features'].shape == (N, D)
    assert bool(jnp.all(jnp.isfinite(out['id_labels'])))
    assert bool(jnp.all(jnp.isfinite(out['id_features'])))
    print("KERNEL_OK")
</pallas_src>

<mosaic_0001>
module attributes {stable_mosaic.version = 11 : i64} {
  func.func @_perceptual_kernel(%arg0: memref<3x1024xbf16, #tpu.memory_space<vmem>>, %arg1: memref<9x16x3xbf16, #tpu.memory_space<vmem>>, %arg2: memref<16x1xf32, #tpu.memory_space<vmem>>, %arg3: memref<16x64xf32, #tpu.memory_space<vmem>>, %arg4: memref<1x64xf32, #tpu.memory_space<vmem>>, %arg5: memref<2x128xf32, #tpu.memory_space<vmem>>) attributes {dimension_semantics = [], scalar_prefetch = 0 : i64, scratch_operands = 0 : i64, tpu.core_type = #tpu.core_type<tc>} {
    %c0 = arith.constant 0 : index
    %c0_0 = arith.constant 0 : index
    %0 = vector.load %arg0[%c0, %c0_0] : memref<3x1024xbf16, #tpu.memory_space<vmem>>, vector<3x1024xbf16>
    %1 = arith.extf %0 : vector<3x1024xbf16> to vector<3x1024xf32>
    %2 = tpu.iota {dimensions = array<i32: 1>} : vector<3x1024xi32>
    %c15_i32 = arith.constant 15 : i32
    %3 = vector.broadcast %c15_i32 : i32 to vector<3x1024xi32>
    %4 = arith.andi %2, %3 : vector<3x1024xi32>
    %c4_i32 = arith.constant 4 : i32
    %5 = vector.broadcast %c4_i32 : i32 to vector<3x1024xi32>
    %6 = arith.shrsi %2, %5 : vector<3x1024xi32>
    %c15_i32_1 = arith.constant 15 : i32
    %7 = vector.broadcast %c15_i32_1 : i32 to vector<3x1024xi32>
    %8 = arith.andi %6, %7 : vector<3x1024xi32>
    %c17_i32 = arith.constant 17 : i32
    %9 = tpu.dynamic_rotate %1 by %c17_i32 dim 1 : vector<3x1024xf32>, i32 -> vector<3x1024xf32>
    %c1_i32 = arith.constant 1 : i32
    %10 = vector.broadcast %c1_i32 : i32 to vector<3x1024xi32>
    %11 = arith.cmpi sge, %8, %10 : vector<3x1024xi32>
    %c1_i32_2 = arith.constant 1 : i32
    %12 = vector.broadcast %c1_i32_2 : i32 to vector<3x1024xi32>
    %13 = arith.cmpi sge, %4, %12 : vector<3x1024xi32>
    %14 = arith.andi %11, %13 : vector<3x1024xi1>
    %cst = arith.constant 0.000000e+00 : f32
    %15 = vector.broadcast %cst : f32 to vector<3x1024xf32>
    %16 = arith.select %14, %9, %15 : vector<3x1024xi1>, vector<3x1024xf32>
    %c0_3 = arith.constant 0 : index
    %c0_4 = arith.constant 0 : index
    %c0_5 = arith.constant 0 : index
    %17 = vector.load %arg1[%c0_3, %c0_4, %c0_5] : memref<9x16x3xbf16, #tpu.memory_space<vmem>>, vector<1x16x3xbf16>
    %18 = vector.shape_cast %17 : vector<1x16x3xbf16> to vector<16x3xbf16>
    %19 = arith.truncf %16 : vector<3x1024xf32> to vector<3x1024xbf16>
    %cst_6 = arith.constant dense<0.000000e+00> : vector<16x1024xf32>
    %20 = tpu.matmul %18, %19, %cst_6 {dimension_numbers = #tpu.dot_dimension_numbers<[1], [0], [0], [1], [0, 0, 1, 1], [], []>} : vector<16x3xbf16>, vector<3x1024xbf16>, vector<16x1024xf32> -> vector<16x1024xf32>
    %c16_i32 = arith.constant 16 : i32
    %21 = tpu.dynamic_rotate %1 by %c16_i32 dim 1 : vector<3x1024xf32>, i32 -> vector<3x1024xf32>
    %c1_i32_7 = arith.constant 1 : i32
    %22 = vector.broadcast %c1_i32_7 : i32 to vector<3x1024xi32>
    %23 = arith.cmpi sge, %8, %22 : vector<3x1024xi32>
    %cst_8 = arith.constant 0.000000e+00 : f32
    %24 = vector.broadcast %cst_8 : f32 to vector<3x1024xf32>
    %25 = arith.select %23, %21, %24 : vector<3x1024xi1>, vector<3x1024xf32>
    %c1 = arith.constant 1 : index
    %c0_9 = arith.constant 0 : index
    %c0_10 = arith.constant 0 : index
    %26 = vector.load %arg1[%c1, %c0_9, %c0_10] : memref<9x16x3xbf16, #tpu.memory_space<vmem>>, vector<1x16x3xbf16>
    %27 = vector.shape_cast %26 : vector<1x16x3xbf16> to vector<16x3xbf16>
    %28 = arith.truncf %25 : vector<3x1024xf32> to vector<3x1024xbf16>
    %cst_11 = arith.constant dense<0.000000e+00> : vector<16x1024xf32>
    %29 = tpu.matmul %27, %28, %cst_11 {dimension_numbers = #tpu.dot_dimension_numbers<[1], [0], [0], [1], [0, 0, 1, 1], [], []>} : vector<16x3xbf16>, vector<3x1024xbf16>, vector<16x1024xf32> -> vector<16x1024xf32>
    %30 = arith.addf %20, %29 : vector<16x1024xf32>
    %c15_i32_12 = arith.constant 15 : i32
    %31 = tpu.dynamic_rotate %1 by %c15_i32_12 dim 1 : vector<3x1024xf32>, i32 -> vector<3x1024xf32>
    %c1_i32_13 = arith.constant 1 : i32
    %32 = vector.broadcast %c1_i32_13 : i32 to vector<3x1024xi32>
    %33 = arith.cmpi sge, %8, %32 : vector<3x1024xi32>
    %c15_i32_14 = arith.constant 15 : i32
    %34 = vector.broadcast %c15_i32_14 : i32 to vector<3x1024xi32>
    %35 = arith.cmpi slt, %4, %34 : vector<3x1024xi32>
    %36 = arith.andi %33, %35 : vector<3x1024xi1>
    %cst_15 = arith.constant 0.000000e+00 : f32
    %37 = vector.broadcast %cst_15 : f32 to vector<3x1024xf32>
    %38 = arith.select %36, %31, %37 : vector<3x1024xi1>, vector<3x1024xf32>
    %c2 = arith.constant 2 : index
    %c0_16 = arith.constant 0 : index
    %c0_17 = arith.constant 0 : index
    %39 = vector.load %arg1[%c2, %c0_16, %c0_17] : memref<9x16x3xbf16, #tpu.memory_space<vmem>>, vector<1x16x3xbf16>
    %40 = vector.shape_cast %39 : vector<1x16x3xbf16> to vector<16x3xbf16>
    %41 = arith.truncf %38 : vector<3x1024xf32> to vector<3x1024xbf16>
    %cst_18 = arith.constant dense<0.000000e+00> : vector<16x1024xf32>
    %42 = tpu.matmul %40, %41, %cst_18 {dimension_numbers = #tpu.dot_dimension_numbers<[1], [0], [0], [1], [0, 0, 1, 1], [], []>} : vector<16x3xbf16>, vector<3x1024xbf16>, vector<16x1024xf32> -> vector<16x1024xf32>
    %43 = arith.addf %30, %42 : vector<16x1024xf32>
    %c1_i32_19 = arith.constant 1 : i32
    %44 = tpu.dynamic_rotate %1 by %c1_i32_19 dim 1 : vector<3x1024xf32>, i32 -> vector<3x1024xf32>
    %c1_i32_20 = arith.constant 1 : i32
    %45 = vector.broadcast %c1_i32_20 : i32 to vector<3x1024xi32>
    %46 = arith.cmpi sge, %4, %45 : vector<3x1024xi32>
    %cst_21 = arith.constant 0.000000e+00 : f32
    %47 = vector.broadcast %cst_21 : f32 to vector<3x1024xf32>
    %48 = arith.select %46, %44, %47 : vector<3x1024xi1>, vector<3x1024xf32>
    %c3 = arith.constant 3 : index
    %c0_22 = arith.constant 0 : index
    %c0_23 = arith.constant 0 : index
    %49 = vector.load %arg1[%c3, %c0_22, %c0_23] : memref<9x16x3xbf16, #tpu.memory_space<vmem>>, vector<1x16x3xbf16>
    %50 = vector.shape_cast %49 : vector<1x16x3xbf16> to vector<16x3xbf16>
    %51 = arith.truncf %48 : vector<3x1024xf32> to vector<3x1024xbf16>
    %cst_24 = arith.constant dense<0.000000e+00> : vector<16x1024xf32>
    %52 = tpu.matmul %50, %51, %cst_24 {dimension_numbers = #tpu.dot_dimension_numbers<[1], [0], [0], [1], [0, 0, 1, 1], [], []>} : vector<16x3xbf16>, vector<3x1024xbf16>, vector<16x1024xf32> -> vector<16x1024xf32>
    %53 = arith.addf %43, %52 : vector<16x1024xf32>
    %c4 = arith.constant 4 : index
    %c0_25 = arith.constant 0 : index
    %c0_26 = arith.constant 0 : index
    %54 = vector.load %arg1[%c4, %c0_25, %c0_26] : memref<9x16x3xbf16, #tpu.memory_space<vmem>>, vector<1x16x3xbf16>
    %55 = vector.shape_cast %54 : vector<1x16x3xbf16> to vector<16x3xbf16>
    %56 = arith.truncf %1 : vector<3x1024xf32> to vector<3x1024xbf16>
    %cst_27 = arith.constant dense<0.000000e+00> : vector<16x1024xf32>
    %57 = tpu.matmul %55, %56, %cst_27 {dimension_numbers = #tpu.dot_dimension_numbers<[1], [0], [0], [1], [0, 0, 1, 1], [], []>} : vector<16x3xbf16>, vector<3x1024xbf16>, vector<16x1024xf32> -> vector<16x1024xf32>
    %58 = arith.addf %53, %57 : vector<16x1024xf32>
    %c1023_i32 = arith.constant 1023 : i32
    %59 = tpu.dynamic_rotate %1 by %c1023_i32 dim 1 : vector<3x1024xf32>, i32 -> vector<3x1024xf32>
    %c15_i32_28 = arith.constant 15 : i32
    %60 = vector.broadcast %c15_i32_28 : i32 to vector<3x1024xi32>
    %61 = arith.cmpi slt, %4, %60 : vector<3x1024xi32>
    %cst_29 = arith.constant 0.000000e+00 : f32
    %62 = vector.broadcast %cst_29 : f32 to vector<3x1024xf32>
    %63 = arith.select %61, %59, %62 : vector<3x1024xi1>, vector<3x1024xf32>
    %c5 = arith.constant 5 : index
    %c0_30 = arith.constant 0 : index
    %c0_31 = arith.constant 0 : index
    %64 = vector.load %arg1[%c5, %c0_30, %c0_31] : memref<9x16x3xbf16, #tpu.memory_space<vmem>>, vector<1x16x3xbf16>
    %65 = vector.shape_cast %64 : vector<1x16x3xbf16> to vector<16x3xbf16>
    %66 = arith.truncf %63 : vector<3x1024xf32> to vector<3x1024xbf16>
    %cst_32 = arith.constant dense<0.000000e+00> : vector<16x1024xf32>
    %67 = tpu.matmul %65, %66, %cst_32 {dimension_numbers = #tpu.dot_dimension_numbers<[1], [0], [0], [1], [0, 0, 1, 1], [], []>} : vector<16x3xbf16>, vector<3x1024xbf16>, vector<16x1024xf32> -> vector<16x1024xf32>
    %68 = arith.addf %58, %67 : vector<16x1024xf32>
    %c1009_i32 = arith.constant 1009 : i32
    %69 = tpu.dynamic_rotate %1 by %c1009_i32 dim 1 : vector<3x1024xf32>, i32 -> vector<3x1024xf32>
    %c15_i32_33 = arith.constant 15 : i32
    %70 = vector.broadcast %c15_i32_33 : i32 to vector<3x1024xi32>
    %71 = arith.cmpi slt, %8, %70 : vector<3x1024xi32>
    %c1_i32_34 = arith.constant 1 : i32
    %72 = vector.broadcast %c1_i32_34 : i32 to vector<3x1024xi32>
    %73 = arith.cmpi sge, %4, %72 : vector<3x1024xi32>
    %74 = arith.andi %71, %73 : vector<3x1024xi1>
    %cst_35 = arith.constant 0.000000e+00 : f32
    %75 = vector.broadcast %cst_35 : f32 to vector<3x1024xf32>
    %76 = arith.select %74, %69, %75 : vector<3x1024xi1>, vector<3x1024xf32>
    %c6 = arith.constant 6 : index
    %c0_36 = arith.constant 0 : index
    %c0_37 = arith.constant 0 : index
    %77 = vector.load %arg1[%c6, %c0_36, %c0_37] : memref<9x16x3xbf16, #tpu.memory_space<vmem>>, vector<1x16x3xbf16>
    %78 = vector.shape_cast %77 : vector<1x16x3xbf16> to vector<16x3xbf16>
    %79 = arith.truncf %76 : vector<3x1024xf32> to vector<3x1024xbf16>
    %cst_38 = arith.constant dense<0.000000e+00> : vector<16x1024xf32>
    %80 = tpu.matmul %78, %79, %cst_38 {dimension_numbers = #tpu.dot_dimension_numbers<[1], [0], [0], [1], [0, 0, 1, 1], [], []>} : vector<16x3xbf16>, vector<3x1024xbf16>, vector<16x1024xf32> -> vector<16x1024xf32>
    %81 = arith.addf %68, %80 : vector<16x1024xf32>
    %c1008_i32 = arith.constant 1008 : i32
    %82 = tpu.dynamic_rotate %1 by %c1008_i32 dim 1 : vector<3x1024xf32>, i32 -> vector<3x1024xf32>
    %c15_i32_39 = arith.constant 15 : i32
    %83 = vector.broadcast %c15_i32_39 : i32 to vector<3x1024xi32>
    %84 = arith.cmpi slt, %8, %83 : vector<3x1024xi32>
    %cst_40 = arith.constant 0.000000e+00 : f32
    %85 = vector.broadcast %cst_40 : f32 to vector<3x1024xf32>
    %86 = arith.select %84, %82, %85 : vector<3x1024xi1>, vector<3x1024xf32>
    %c7 = arith.constant 7 : index
    %c0_41 = arith.constant 0 : index
    %c0_42 = arith.constant 0 : index
    %87 = vector.load %arg1[%c7, %c0_41, %c0_42] : memref<9x16x3xbf16, #tpu.memory_space<vmem>>, vector<1x16x3xbf16>
    %88 = vector.shape_cast %87 : vector<1x16x3xbf16> to vector<16x3xbf16>
    %89 = arith.truncf %86 : vector<3x1024xf32> to vector<3x1024xbf16>
    %cst_43 = arith.constant dense<0.000000e+00> : vector<16x1024xf32>
    %90 = tpu.matmul %88, %89, %cst_43 {dimension_numbers = #tpu.dot_dimension_numbers<[1], [0], [0], [1], [0, 0, 1, 1], [], []>} : vector<16x3xbf16>, vector<3x1024xbf16>, vector<16x1024xf32> -> vector<16x1024xf32>
    %91 = arith.addf %81, %90 : vector<16x1024xf32>
    %c1007_i32 = arith.constant 1007 : i32
    %92 = tpu.dynamic_rotate %1 by %c1007_i32 dim 1 : vector<3x1024xf32>, i32 -> vector<3x1024xf32>
    %c15_i32_44 = arith.constant 15 : i32
    %93 = vector.broadcast %c15_i32_44 : i32 to vector<3x1024xi32>
    %94 = arith.cmpi slt, %8, %93 : vector<3x1024xi32>
    %c15_i32_45 = arith.constant 15 : i32
    %95 = vector.broadcast %c15_i32_45 : i32 to vector<3x1024xi32>
    %96 = arith.cmpi slt, %4, %95 : vector<3x1024xi32>
    %97 = arith.andi %94, %96 : vector<3x1024xi1>
    %cst_46 = arith.constant 0.000000e+00 : f32
    %98 = vector.broadcast %cst_46 : f32 to vector<3x1024xf32>
    %99 = arith.select %97, %92, %98 : vector<3x1024xi1>, vector<3x1024xf32>
    %c8 = arith.constant 8 : index
    %c0_47 = arith.constant 0 : index
    %c0_48 = arith.constant 0 : index
    %100 = vector.load %arg1[%c8, %c0_47, %c0_48] : memref<9x16x3xbf16, #tpu.memory_space<vmem>>, vector<1x16x3xbf16>
    %101 = vector.shape_cast %100 : vector<1x16x3xbf16> to vector<16x3xbf16>
    %102 = arith.truncf %99 : vector<3x1024xf32> to vector<3x1024xbf16>
    %cst_49 = arith.constant dense<0.000000e+00> : vector<16x1024xf32>
    %103 = tpu.matmul %101, %102, %cst_49 {dimension_numbers = #tpu.dot_dimension_numbers<[1], [0], [0], [1], [0, 0, 1, 1], [], []>} : vector<16x3xbf16>, vector<3x1024xbf16>, vector<16x1024xf32> -> vector<16x1024xf32>
    %104 = arith.addf %91, %103 : vector<16x1024xf32>
    %c0_50 = arith.constant 0 : index
    %c0_51 = arith.constant 0 : index
    %105 = vector.load %arg2[%c0_50, %c0_51] : memref<16x1xf32, #tpu.memory_space<vmem>>, vector<16x1xf32>
    %106 = vector.broadcast %105 : vector<16x1xf32> to vector<16x1024xf32>
    %107 = arith.addf %104, %106 : vector<16x1024xf32>
    %cst_52 = arith.constant 0.000000e+00 : f32
    %108 = vector.broadcast %cst_52 : f32 to vector<16x1024xf32>
    %109 = arith.maximumf %107, %108 : vector<16x1024xf32>
    %110 = tpu.iota {dimensions = array<i32: 1>} : vector<16x4xi32>
    %111 = vector.extract_strided_slice %109 {offsets = [0, 0], sizes = [16, 256], strides = [1, 1]} : vector<16x1024xf32> to vector<16x256xf32>
    %cst_53 = arith.constant dense<0.000000e+00> : vector<16xf32>
    %112 = vector.multi_reduction <add>, %111, %cst_53 [1] : vector<16x256xf32> to vector<16xf32>
    %113 = vector.shape_cast %112 : vector<16xf32> to vector<16x1xf32>
    %c0_i32 = arith.constant 0 : i32
    %114 = vector.broadcast %c0_i32 : i32 to vector<16x4xi32>
    %115 = arith.cmpi eq, %110, %114 : vector<16x4xi32>
    %cst_54 = arith.constant 0.000000e+00 : f32
    %116 = vector.shape_cast %113 : vector<16x1xf32> to vector<16x1xf32>
    %117 = vector.broadcast %116 : vector<16x1xf32> to vector<16x4xf32>
    %118 = vector.broadcast %cst_54 : f32 to vector<16x4xf32>
    %119 = arith.select %115, %117, %118 : vector<16x4xi1>, vector<16x4xf32>
    %120 = vector.extract_strided_slice %109 {offsets = [0, 256], sizes = [16, 256], strides = [1, 1]} : vector<16x1024xf32> to vector<16x256xf32>
    %cst_55 = arith.constant dense<0.000000e+00> : vector<16xf32>
    %121 = vector.multi_reduction <add>, %120, %cst_55 [1] : vector<16x256xf32> to vector<16xf32>
    %122 = vector.shape_cast %121 : vector<16xf32> to vector<16x1xf32>
    %c1_i32_56 = arith.constant 1 : i32
    %123 = vector.broadcast %c1_i32_56 : i32 to vector<16x4xi32>
    %124 = arith.cmpi eq, %110, %123 : vector<16x4xi32>
    %cst_57 = arith.constant 0.000000e+00 : f32
    %125 = vector.shape_cast %122 : vector<16x1xf32> to vector<16x1xf32>
    %126 = vector.broadcast %125 : vector<16x1xf32> to vector<16x4xf32>
    %127 = vector.broadcast %cst_57 : f32 to vector<16x4xf32>
    %128 = arith.select %124, %126, %127 : vector<16x4xi1>, vector<16x4xf32>
    %129 = arith.addf %119, %128 : vector<16x4xf32>
    %130 = vector.extract_strided_slice %109 {offsets = [0, 512], sizes = [16, 256], strides = [1, 1]} : vector<16x1024xf32> to vector<16x256xf32>
    %cst_58 = arith.constant dense<0.000000e+00> : vector<16xf32>
    %131 = vector.multi_reduction <add>, %130, %cst_58 [1] : vector<16x256xf32> to vector<16xf32>
    %132 = vector.shape_cast %131 : vector<16xf32> to vector<16x1xf32>
    %c2_i32 = arith.constant 2 : i32
    %133 = vector.broadcast %c2_i32 : i32 to vector<16x4xi32>
    %134 = arith.cmpi eq, %110, %133 : vector<16x4xi32>
    %cst_59 = arith.constant 0.000000e+00 : f32
    %135 = vector.shape_cast %132 : vector<16x1xf32> to vector<16x1xf32>
    %136 = vector.broadcast %135 : vector<16x1xf32> to vector<16x4xf32>
    %137 = vector.broadcast %cst_59 : f32 to vector<16x4xf32>
    %138 = arith.select %134, %136, %137 : vector<16x4xi1>, vector<16x4xf32>
    %139 = arith.addf %129, %138 : vector<16x4xf32>
    %140 = vector.extract_strided_slice %109 {offsets = [0, 768], sizes = [16, 256], strides = [1, 1]} : vector<16x1024xf32> to vector<16x256xf32>
    %cst_60 = arith.constant dense<0.000000e+00> : vector<16xf32>
    %141 = vector.multi_reduction <add>, %140, %cst_60 [1] : vector<16x256xf32> to vector<16xf32>
    %142 = vector.shape_cast %141 : vector<16xf32> to vector<16x1xf32>
    %c3_i32 = arith.constant 3 : i32
    %143 = vector.broadcast %c3_i32 : i32 to vector<16x4xi32>
    %144 = arith.cmpi eq, %110, %143 : vector<16x4xi32>
    %cst_61 = arith.constant 0.000000e+00 : f32
    %145 = vector.shape_cast %142 : vector<16x1xf32> to vector<16x1xf32>
    %146 = vector.broadcast %145 : vector<16x1xf32> to vector<16x4xf32>
    %147 = vector.broadcast %cst_61 : f32 to vector<16x4xf32>
    %148 = arith.select %144, %146, %147 : vector<16x4xi1>, vector<16x4xf32>
    %149 = arith.addf %139, %148 : vector<16x4xf32>
    %cst_62 = arith.constant 3.906250e-03 : f32
    %150 = vector.broadcast %cst_62 : f32 to vector<16x4xf32>
    %151 = arith.mulf %149, %150 : vector<16x4xf32>
    %152 = tpu.transpose %151, [1, 0] : vector<16x4xf32> -> vector<4x16xf32>
    %c0_63 = arith.constant 0 : index
    %c0_64 = arith.constant 0 : index
    %153 = vector.load %arg3[%c0_63, %c0_64] : memref<16x64xf32, #tpu.memory_space<vmem>>, vector<16x64xf32>
    %cst_65 = arith.constant dense<0.000000e+00> : vector<4x64xf32>
    %154 = tpu.matmul %152, %153, %cst_65 {dimension_numbers = #tpu.dot_dimension_numbers<[1], [0], [0], [1], [0, 0, 1, 1], [], []>} : vector<4x16xf32>, vector<16x64xf32>, vector<4x64xf32> -> vector<4x64xf32>
    %c0_66 = arith.constant 0 : index
    %c0_67 = arith.constant 0 : index
    %155 = vector.load %arg4[%c0_66, %c0_67] : memref<1x64xf32, #tpu.memory_space<vmem>>, vector<1x64xf32>
    %156 = vector.broadcast %155 : vector<1x64xf32> to vector<4x64xf32>
    %157 = arith.addf %154, %156 : vector<4x64xf32>
    %158 = arith.mulf %157, %157 : vector<4x64xf32>
    %cst_68 = arith.constant dense<0.000000e+00> : vector<4xf32>
    %159 = vector.multi_reduction <add>, %158, %cst_68 [1] : vector<4x64xf32> to vector<4xf32>
    %160 = vector.shape_cast %159 : vector<4xf32> to vector<4x1xf32>
    %cst_69 = arith.constant 9.99999996E-13 : f32
    %161 = vector.broadcast %cst_69 : f32 to vector<4x1xf32>
    %162 = arith.addf %160, %161 : vector<4x1xf32>
    %163 = math.rsqrt %162 : vector<4x1xf32>
    %164 = vector.broadcast %163 : vector<4x1xf32> to vector<4x64xf32>
    %165 = arith.mulf %157, %164 : vector<4x64xf32>
    %166 = vector.extract_strided_slice %165 {offsets = [0, 0], sizes = [2, 64], strides = [1, 1]} : vector<4x64xf32> to vector<2x64xf32>
    %c0_70 = arith.constant 0 : index
    %c0_71 = arith.constant 0 : index
    %167 = vector.load %arg5[%c0_70, %c0_71] : memref<2x128xf32, #tpu.memory_space<vmem>>, vector<2x64xf32>
    tpu.vector_store %arg5[%c0_70, %c0_71], %166 {strides = array<i32>} : memref<2x128xf32, #tpu.memory_space<vmem>>, vector<2x64xf32>,
    %168 = vector.extract_strided_slice %165 {offsets = [2, 0], sizes = [2, 64], strides = [1, 1]} : vector<4x64xf32> to vector<2x64xf32>
    %c0_72 = arith.constant 0 : index
    %c64 = arith.constant 64 : index
    %169 = vector.load %arg5[%c0_72, %c64] : memref<2x128xf32, #tpu.memory_space<vmem>>, vector<2x64xf32>
    tpu.vector_store %arg5[%c0_72, %c64], %168 {strides = array<i32>} : memref<2x128xf32, #tpu.memory_space<vmem>>, vector<2x64xf32>,
    return
  }
}

</mosaic_0001>

<bundles_post_ra>
// kernel: perceptual_pair.1
= control target key start
LH: loop header
LB: loop body
LE: loop exit
PB: predicated region body
PF: predicated region fallthrough
CT: control target
= control target key end

     0   :  { %s3056_s22 = smov 16   ;;  %v3058_v16 = vmov 0   ;;  %s3059_s23 = smov 15   ;;  %v27_v17 = vlaneseq  ;;  %vm192_vm0 = vcmask 1040384   ;;  %vm193_vm1 = vcmask 1041408   ;;  %s3978_s0 = inlined_call_operand.vmem [shape: bf16[3,1024], index: 0, kind: input, shape index: {}]   ;;  %s3979_s1 = inlined_call_operand.vmem [shape: bf16[9,16,3], index: 1, kind: input, shape index: {}]   ;;  %s3980_s2 = inlined_call_operand.vmem [shape: f32[16,1], index: 2, kind: input, shape index: {}]   ;;  %s3981_s3 = inlined_call_operand.vmem [shape: f32[16,64], index: 3, kind: input, shape index: {}]   ;;  %s3982_s4 = inlined_call_operand.vmem [shape: f32[1,64], index: 4, kind: input, shape index: {}]   ;;  %s3983_s5 = inlined_call_operand.vmem [shape: f32[2,128], index: 5, kind: output, shape index: {}]  }
   0x1   :  { %v3104_v0 = vld [vmem:[%s3978_s0] sm:$0xff]  ;;  %v3109_v1 = vld [vmem:[%s3978_s0 + $0x8] sm:$0xff]  ;;  %s3057_s0 = smov 17   ;;  %252 = vmatprep.mubr.bf16.mxu0 %v3058_v16  ;;  %295 = vmatprep.mubr.bf16.mxu1 %v3058_v16  ;;  %s3060_s24 = smov 1   ;;  %v3065_v31 = vmov 65535  }
   0x2   :  { %v24_v2 = vunpack.c.h.bf16 %v3104_v0  ;;  %v23_v3 = vunpack.c.l.bf16 %v3104_v0  ;;  %v25_v4 = vunpack.c.l.bf16 %v3109_v1  ;;  %v26_v5 = vunpack.c.h.bf16 %v3109_v1  ;;  %3041 = vset.pattern.permute.xlu0 %v3058_v16  ;;  %3042 = vset.pattern.permute.xlu1 %v3058_v16  ;;  %s3061_s25 = smov 127   ;;  %s3062_s26 = smov 113  }
   0x3   :  { %s3063_s27 = smov 112   ;;  %s3064_s28 = smov 111   ;;  %v3120_v18 = vand.u32 127, %v27_v17  ;;  %v194_v32 = vsel %vm192_vm0, 4294967295, %v3065_v31 }
   0x4   :  { %v65_v6 = vcombine.high %v24_v2, %v24_v2  ;;  %v64_v7 = vcombine.high %v23_v3, %v23_v3  ;;  %v66_v8 = vcombine.high %v25_v4, %v25_v4  ;;  %v67_v9 = vcombine.high %v26_v5, %v26_v5 }
   0x5   :  { %v3123_v19 = vadd.s32 512, %v3120_v18  ;;  %v3126_v20 = vadd.s32 768, %v3120_v18  ;;  %v3129_v21 = vadd.s32 896, %v3120_v18  ;;  %v3132_v22 = vadd.s32 128, %v3120_v18 }
   0x6   :  { %145 = vrot.lane.b32.xlu1 %v65_v6, %s3056_s22  ;;  %v2921_v10 = vpack.i.bf16 %v64_v7, %v23_v3  ;;  %v2931_v11 = vpack.i.bf16 %v66_v8, %v25_v4  ;;  %v2926_v12 = vpack.i.bf16 %v24_v2, %v67_v9  ;;  %v3026_v13 = vpack.i.bf16 %v24_v2, %v64_v7 }
   0x7   :  { %v3031_v14 = vpack.i.bf16 %v65_v6, %v23_v3  ;;  %v3036_v15 = vpack.i.bf16 %v26_v5, %v66_v8  ;;  %v3135_v23 = vadd.s32 384, %v3120_v18  ;;  %v48_v24 = vshra.s32 %v3123_v19, 4 }
   0x8   :  { %2922 = vrot.lane.b32.xlu0 %v2921_v10, %s3056_s22  ;;  %v50_v25 = vshra.s32 %v3126_v20, 4  ;;  %v51_v26 = vshra.s32 %v3129_v21, 4  ;;  %v3141_v27 = vadd.s32 640, %v3120_v18  ;;  %v3144_v28 = vadd.s32 256, %v3120_v18 }
   0x9   :  { %v45_v29 = vshra.s32 %v3132_v22, 4  ;;  %v44_v30 = vshra.s32 %v3120_v18, 4  ;;  %v47_v33 = vshra.s32 %v3135_v23, 4  ;;  %v3149_v34 = vand.u32 15, %v48_v24 }
   0xa   :  { %2932 = vrot.lane.b32.xlu1 %v2931_v11, %s3056_s22  ;;  %v3151_v35 = vand.u32 15, %v50_v25  ;;  %v3153_v36 = vand.u32 15, %v51_v26  ;;  %v49_v37 = vshra.s32 %v3141_v27, 4  ;;  %v37_v38 = vand.u32 15, %v3132_v22 }
   0xb   :  { %v36_v39 = vand.u32 15, %v3120_v18  ;;  %v46_v40 = vshra.s32 %v3144_v28, 4  ;;  %v3159_v41 = vsel %vm193_vm1, %v194_v32, 0  ;;  %v3161_v42 = vand.u32 15, %v45_v29 }
   0xc   :  { %2927 = vrot.lane.b32.xlu0 %v2926_v12, %s3056_s22  ;;  %v3163_v43 = vand.u32 15, %v44_v30  ;;  %vm155_vm2 = vcmp.lt.s32.totalorder %v3120_v18, 16  ;;  %vm88_vm3 = vcmp.lt.s32.totalorder %v3120_v18, 17  ;;  %v3167_v45 = vand.u32 15, %v47_v33 }
   0xd   :  { %v39_v46 = vand.u32 15, %v3135_v23  ;;  %vm3984_vm4 = vcmp.ge.s32.totalorder %v3149_v34, 1  ;;  %vm3986_vm5 = vcmp.ge.s32.totalorder %v3151_v35, 1  ;;  %vm3988_vm6 = vcmp.ge.s32.totalorder %v3153_v36, 1 }
   0xe   :  { %2937 = vrot.lane.b32.xlu1 %v2921_v10, %s3057_s0  ;;  %v3173_v47 = vand.u32 15, %v49_v37  ;;  %vm3177_vm7 = vcmp.ge.s32.totalorder %v37_v38, 1  ;;  %vm3183_vm8 = vcmp.ge.s32.totalorder %v36_v39, 1  ;;  %v38_v51 = vand.u32 15, %v3144_v28  ;;  %v3474_v28 = vld [vmem:[%s3979_s1] sm:$0xff]  }
   0xf   :  { %v3188_v52 = vand.u32 15, %v46_v40  ;;  %v43_v53 = vand.u32 15, %v3129_v21  ;;  %vm3985_vm9 = vcmp.ge.s32.totalorder %v3161_v42, 1  ;;  %vm3987_vm10 = vcmp.ge.s32.totalorder %v3163_v43, 1 }
  0x10   :  { %151 = vrot.lane.b32.xlu0 %v26_v5, %s3056_s22  ;;  %vm3992_vm11 = vcmp.ge.s32.totalorder %v3167_v45, 1  ;;  %vm3196_vm12 = vcmp.ge.s32.totalorder %v39_v46, 1  ;;  %v40_v58 = vand.u32 15, %v3123_v19  ;;  %v42_v59 = vand.u32 15, %v3126_v20 }
  0x11   :  { %vm3990_vm13 = vcmp.ge.s32.totalorder %v3173_v47, 1  ;;  %vm3989_vm14 = vcmp.ge.s32.totalorder %v3188_v52, 1  ;;  %vm3210_vm15 = vcmp.ge.s32.totalorder %v38_v51, 1  ;;  %vm3216_vm0 = vcmp.ge.s32.totalorder %v43_v53, 1 }
  0x12   :  { %78 = vrot.lane.b32.xlu1 %v65_v6, %s3057_s0  ;;  %vm3991_vm1 = vcmask 23552  }
  0x14   :  { %2942 = vrot.lane.b32.xlu0 %v2926_v12, %s3057_s0 }
  0x16   :  { %84 = vrot.lane.b32.xlu1 %v26_v5, %s3057_s0 }
  0x18   :  { %2947 = vrot.lane.b32.xlu0 %v2931_v11, %s3057_s0 }
  0x1a   :  { %2957 = vrot.lane.b32.xlu1 %v2926_v12, %s3059_s23 }
  0x1c   :  { %2952 = vrot.lane.b32.xlu0 %v2921_v10, %s3059_s23 }
  0x1e   :  { %2962 = vrot.lane.b32.xlu1 %v2931_v11, %s3059_s23 }
  0x20   :  { %602 = vrot.lane.b32.xlu0 %v65_v6, %s3059_s23 }
  0x22   :  { %2967 = vrot.lane.b32.xlu1 %v2921_v10, %s3060_s24 }
  0x24   :  { %608 = vrot.lane.b32.xlu0 %v26_v5, %s3059_s23 }
  0x26   :  { %882 = vrot.lane.b32.xlu1 %v65_v6, %s3060_s24 }
  0x28   :  { %2972 = vrot.lane.b32.xlu0 %v2926_v12, %s3060_s24 }
  0x2a   :  { %888 = vrot.lane.b32.xlu1 %v26_v5, %s3060_s24 }
  0x2c   :  { %2977 = vrot.lane.b32.xlu0 %v2931_v11, %s3060_s24 }
  0x2e   :  { %2987 = vrot.lane.b32.xlu1 %v3031_v14, %s3061_s25 }
  0x30   :  { %2982 = vrot.lane.b32.xlu0 %v3026_v13, %s3061_s25 }
  0x32   :  { %2992 = vrot.lane.b32.xlu1 %v3036_v15, %s3061_s25 }
  0x34   :  { %1407 = vrot.lane.b32.xlu0 %v25_v4, %s3061_s25 }
  0x36   :  { %2997 = vrot.lane.b32.xlu1 %v3026_v13, %s3062_s26 }
  0x38   :  { %1413 = vrot.lane.b32.xlu0 %v67_v9, %s3061_s25 }
  0x3a   :  { %1671 = vrot.lane.b32.xlu1 %v25_v4, %s3062_s26 }
  0x3c   :  { %3002 = vrot.lane.b32.xlu0 %v3031_v14, %s3062_s26 }
  0x3e   :  { %1677 = vrot.lane.b32.xlu1 %v67_v9, %s3062_s26 }
  0x40   :  { %3007 = vrot.lane.b32.xlu0 %v3036_v15, %s3062_s26 }
  0x42   :  { %3017 = vrot.lane.b32.xlu1 %v3031_v14, %s3063_s27 }
  0x44   :  { %3012 = vrot.lane.b32.xlu0 %v3026_v13, %s3063_s27 }
  0x46   :  { %3022 = vrot.lane.b32.xlu1 %v3036_v15, %s3063_s27 }
  0x48   :  { %1951 = vrot.lane.b32.xlu0 %v25_v4, %s3063_s27 }
  0x4a   :  { %3027 = vrot.lane.b32.xlu1 %v3026_v13, %s3064_s28  ;;  %v41_v13 = vand.u32 15, %v3141_v27 }
  0x4c   :  { %1957 = vrot.lane.b32.xlu0 %v67_v9, %s3063_s27 }
  0x4e   :  { %2215 = vrot.lane.b32.xlu1 %v25_v4, %s3064_s28 }
  0x50   :  { %3032 = vrot.lane.b32.xlu0 %v3031_v14, %s3064_s28 }
  0x52   :  { %2221 = vrot.lane.b32.xlu1 %v67_v9, %s3064_s28 }
  0x54   :  { %3037 = vrot.lane.b32.xlu0 %v3036_v15, %s3064_s28  ;;  %s3070_s28 = smov 64  }
  0x78   :  { %v146_v44 = vpop.permute.xlu1 %145 }
  0x7a   :  { %v2923_v48 = vpop.permute.xlu0 %2922 }
  0x7b   :  { %v2925_v54 = vunpack.i.h.bf16 %v2923_v48  ;;  %v2924_v55 = vunpack.i.l.bf16 %v2923_v48 }
  0x7c   :  { %v2933_v56 = vpop.permute.xlu1 %2932 }
  0x7d   :  { %v2935_v60 = vunpack.i.h.bf16 %v2933_v56  ;;  %v2934_v61 = vunpack.i.l.bf16 %v2933_v56  ;;  %v162_v62 = vsel %vm155_vm2, %v2924_v55, %v2925_v54 }
  0x7e   :  { %v2928_v63 = vpop.permute.xlu0 %2927  ;;  %v165_v2 = vsel %vm3985_vm9, %v162_v62, 0.0 }
  0x7f   :  { %v158_v5 = vsel %vm155_vm2, %v2934_v61, %v2935_v60  ;;  %v159_v6 = vsel %vm155_vm2, %v146_v44, %v2934_v61  ;;  %v2930_v7 = vunpack.i.h.bf16 %v2928_v63  ;;  %v2929_v8 = vunpack.i.l.bf16 %v2928_v63 }
  0x80   :  { %v168_v9 = vsel %vm3984_vm4, %v159_v6, 0.0  ;;  %v176_v10 = vpack.c.bf16 %v165_v2, %v165_v2  ;;  %v2938_v11 = vpop.permute.xlu1 %2937  ;;  %v169_v12 = vsel %vm3990_vm13, %v158_v5, 0.0  ;;  %vm3246_vm4 = vmand %vm3985_vm9, %vm3177_vm7  ;;  %vm3273_vm9 = vcmp.ge.s32.totalorder %v41_v13, 1 }
  0x81   :  { %v179_v14 = vpack.c.bf16 %v168_v9, %v168_v9  ;;  %v2940_v15 = vunpack.i.h.bf16 %v2938_v11  ;;  %v2939_v24 = vunpack.i.l.bf16 %v2938_v11  ;;  %v163_v25 = vsel %vm155_vm2, %v2929_v8, %v2924_v55  ;;  %v3288_v11 = vld [vmem:[%s3979_s1 + $0x8] sm:$0xff]  }
  0x82   :  { %v152_v26 = vpop.permute.xlu0 %151  ;;  %v200_v29 = vand.u32 %v3159_v41, %v176_v10  ;;  %v164_v30 = vsel %vm3987_vm10, %v163_v25, 0.0  ;;  %v160_v31 = vsel %vm155_vm2, %v2930_v7, %v146_v44  ;;  %v161_v32 = vsel %vm155_vm2, %v2925_v54, %v2930_v7 }
  0x83   :  { %v156_v33 = vsel %vm155_vm2, %v152_v26, %v2929_v8  ;;  %v157_v37 = vsel %vm155_vm2, %v2935_v60, %v152_v26  ;;  %v95_v44 = vsel %vm88_vm3, %v2939_v24, %v2940_v15  ;;  %v175_v48 = vpack.c.bf16 %v164_v30, %v164_v30  ;;  %vm3266_vm2 = vmand %vm3987_vm10, %vm3183_vm8 }
  0x84   :  { %v170_v54 = vsel %vm3986_vm5, %v157_v37, 0.0  ;;  %v171_v55 = vsel %vm3988_vm6, %v156_v33, 0.0  ;;  %220 = vmatprep.subr.bf16.mxu0 %v200_v29  ;;  %v167_v56 = vsel %vm3992_vm11, %v160_v31, 0.0  ;;  %v3258_v60 = vpop.permute.xlu1 %78  ;;  %v166_v61 = vsel %vm3989_vm14, %v161_v32, 0.0  ;;  %vm3281_vm5 = vmand %vm3992_vm11, %vm3196_vm12 }
  0x85   :  { %v182_v62 = vpack.c.bf16 %v171_v55, %v171_v55  ;;  %v197_v2 = vand.u32 %v3159_v41, %v175_v48  ;;  %v178_v5 = vpack.c.bf16 %v167_v56, %v167_v56  ;;  %v181_v7 = vpack.c.bf16 %v170_v54, %v170_v54  ;;  %vm3297_vm10 = vmand %vm3989_vm14, %vm3210_vm15 }
  0x86   :  { %v2943_v8 = vpop.permute.xlu0 %2942  ;;  %v177_v10 = vpack.c.bf16 %v166_v61, %v166_v61  ;;  %v180_v25 = vpack.c.bf16 %v169_v12, %v169_v12  ;;  %v122_v26 = vsel %vm3246_vm4, %v95_v44, 0.0  ;;  %v209_v33 = vand.u32 %v3159_v41, %v179_v14  ;;  %vm3309_vm4 = vmand %vm3988_vm6, %vm3216_vm0 }
  0x87   :  { %v2945_v29 = vunpack.i.h.bf16 %v2943_v8  ;;  %v2944_v30 = vunpack.i.l.bf16 %v2943_v8  ;;  %221 = vmatpush1.bf16.msra.mxu0 %v197_v2  ;;  %v206_v31 = vand.u32 %v3159_v41, %v178_v5  ;;  %v218_v37 = vand.u32 %v3159_v41, %v182_v62 }
  0x88   :  { %v203_v12 = vand.u32 %v3159_v41, %v177_v10  ;;  %v212_v40 = vand.u32 %v3159_v41, %v180_v25  ;;  %v85_v48 = vpop.permute.xlu1 %84  ;;  %v132_v54 = vpack.c.bf16 %v122_v26, %v122_v26  ;;  %v215_v62 = vand.u32 %v3159_v41, %v181_v7 }
  0x89   :  { %v94_v55 = vsel %vm88_vm3, %v2940_v15, %v2945_v29  ;;  %v96_v14 = vsel %vm88_vm3, %v2944_v30, %v2939_v24  ;;  %263 = vmatprep.subr.bf16.mxu1 %v206_v31  ;;  %v93_v56 = vsel %vm88_vm3, %v2945_v29, %v3258_v60  ;;  %v89_v61 = vsel %vm88_vm3, %v85_v48, %v2944_v30 }
  0x8a   :  { %v121_v2 = vsel %vm3266_vm2, %v96_v14, 0.0  ;;  %v124_v5 = vsel %vm3281_vm5, %v93_v56, 0.0  ;;  %v123_v15 = vsel %vm3297_vm10, %v94_v55, 0.0  ;;  %264 = vmatpush1.bf16.msra.mxu1 %v203_v12  ;;  %v2948_v24 = vpop.permute.xlu0 %2947  ;;  %2705 = vmatmul.mubr.msk.bf16.vlgmr.msra.gmra.mrb[0].mxu0 %vm3991_vm1, %v3288_v11  ;;  %v128_v63 = vsel %vm3309_vm4, %v89_v61, 0.0  ;;  %vm3364_vm4 = vmand %vm3990_vm13, %vm3273_vm9  ;;  %v2479_v14 = vld [vmem:[%s3980_s2] sm:$0xff] }
  0x8b   :  { %v134_v8 = vpack.c.bf16 %v124_v5, %v124_v5  ;;  %349 = vmatprep.subr.bf16.mxu1 %v218_v37  ;;  %v2950_v10 = vunpack.i.h.bf16 %v2948_v24  ;;  %v2949_v25 = vunpack.i.l.bf16 %v2948_v24  ;;  %306 = vmatprep.subr.bf16.mxu0 %v212_v40  ;;  %vm3335_vm2 = vcmp.ge.s32.totalorder %v40_v58, 1 }
  0x8c   :  { %v4033_v7 = vmov 0  ;;  %307 = vmatpush1.bf16.msra.mxu0 %v209_v33  ;;  %338 = vmatprep.mubr.bf16.mxu0 %v3058_v16  ;;  %v404_v9 = vand.u32 %v3159_v41, %v132_v54  ;;  %v131_v26 = vpack.c.bf16 %v121_v2, %v121_v2  ;;  %v3341_v29 = vpop.permute.xlu1 %2957  ;;  %vm3345_vm5 = vcmp.lt.s32.totalorder %v37_v38, 15 }
  0x8d   :  { %v4034_v7 = vsel %vm3335_vm2, 4294967295, %v4033_v7  ;;  %v4035_v30 = vmov 0  ;;  %v91_v31 = vsel %vm88_vm3, %v2949_v25, %v2950_v10  ;;  %2706 = vmatmul.mubr.msk.bf16.vlgmr.msra.gmra.mrb[0].mxu1 %vm3991_vm1, %v3288_v11  ;;  %vm3355_vm10 = vcmp.ge.s32.totalorder %v42_v59, 1  ;;  %2483 = vperm.xlu0 %3041, %v2479_v14  }
  0x8e   :  { %v4036_v30 = vsel %vm3345_vm5, 4294967295, %v4035_v30  ;;  %v4037_v32 = vmov 0  ;;  %v410_v33 = vand.u32 %v3159_v41, %v134_v8  ;;  %v138_v38 = vpack.c.bf16 %v128_v63, %v128_v63  ;;  %350 = vmatpush1.bf16.msra.mxu1 %v215_v62  ;;  %424 = vmatprep.subr.bf16.mxu0 %v404_v9  ;;  %v2953_v37 = vpop.permute.xlu0 %2952 }
  0x8f   :  { %v4038_v32 = vsel %vm3355_vm10, 4294967295, %v4037_v32  ;;  %v133_v12 = vpack.c.bf16 %v123_v15, %v123_v15  ;;  %vm3371_vm14 = vcmp.lt.s32.totalorder %v39_v46, 15  ;;  %v4041_v40 = vmov 0  ;;  %381 = vmatprep.mubr.bf16.mxu1 %v3058_v16 }
  0x90   :  { %v4042_v40 = vsel %vm3371_vm14, 4294967295, %v4041_v40  ;;  %vm4043_vm13 = vcmp.ge.s32.totalorder %v3149_v34, 1  ;;  %v92_v54 = vsel %vm88_vm3, %v3258_v60, %v2949_v25  ;;  %v401_v23 = vand.u32 %v3159_v41, %v131_v26  ;;  %467 = vmatprep.subr.bf16.mxu1 %v410_v33  ;;  %v3416_v15 = vpop.permute.xlu1 %2962 }
  0x91   :  { %vm3379_vm1 = vmand %vm4043_vm13, %vm3335_vm2  ;;  %v2955_v46 = vunpack.i.h.bf16 %v2953_v37  ;;  %v2954_v55 = vunpack.i.l.bf16 %v2953_v37  ;;  %vm4046_vm6 = vcmp.ge.s32.totalorder %v3151_v35, 1  ;;  %v90_v56 = vsel %vm88_vm3, %v2950_v10, %v85_v48 }
  0x92   :  { %vm3392_vm11 = vmand %vm4046_vm6, %vm3355_vm10  ;;  %v2960_v60 = vunpack.i.h.bf16 %v3341_v29  ;;  %v126_v61 = vsel %vm3364_vm4, %v91_v31, 0.0  ;;  %vm3403_vm13 = vcmp.lt.s32.totalorder %v36_v39, 15  ;;  %v4049_v62 = vmov 0  ;;  %v3439_v10 = vpop.permute.xlu0 %602 }
  0x93   :  { %v4050_v62 = vsel %vm3403_vm13, 4294967295, %v4049_v62  ;;  %v2959_v2 = vunpack.i.l.bf16 %v3341_v29  ;;  %vm4051_vm6 = vcmp.ge.s32.totalorder %v3167_v45, 1  ;;  %v136_v48 = vpack.c.bf16 %v126_v61, %v126_v61 }
  0x94   :  { %vm3412_vm10 = vmand %vm4051_vm6, %vm3371_vm14  ;;  %vm3420_vm3 = vcmp.lt.s32.totalorder %v41_v13, 15  ;;  %v4054_v39 = vmov 0  ;;  %vm4056_vm4 = vcmp.ge.s32.totalorder %v3161_v42, 1  ;;  %v125_v8 = vsel %vm3379_vm1, %v92_v54, 0.0  ;;  %v3512_v24 = vpop.permute.xlu1 %2967 }
  0x95   :  { %v4055_v39 = vsel %vm3420_vm3, 4294967295, %v4054_v39  ;;  %vm3428_vm2 = vmand %vm4056_vm4, %vm3345_vm5  ;;  %vm4059_vm6 = vcmask 23552   ;;  %v407_v27 = vand.u32 %v3159_v41, %v133_v12  ;;  %vm4060_vm14 = vcmp.lt.s32.totalorder %v3120_v18, 15 }
  0x96   :  { %2707 = vmatmul.mubr.msk.bf16.vlgmr.msra.gmra.mrb[4].mxu0 %vm4059_vm6, %v3288_v11  ;;  %v619_v13 = vsel %vm4060_vm14, %v2954_v55, %v2955_v46  ;;  %v2965_v25 = vunpack.i.h.bf16 %v3416_v15  ;;  %v127_v63 = vsel %vm3392_vm11, %v90_v56, 0.0  ;;  %v422_v9 = vand.u32 %v3159_v41, %v138_v38  ;;  %vm4061_vm1 = vmmov %vm4060_vm14  ;;  %v2480_v56 = vld [vmem:[%s3980_s2 + $0x8] sm:$0xff] }
  0x97   :  { %425 = vmatpush1.bf16.msra.mxu0 %v401_v23  ;;  %v617_v26 = vsel %vm4061_vm1, %v2960_v60, %v3439_v10  ;;  %456 = vmatprep.mubr.bf16.mxu0 %v3058_v16  ;;  %v416_v29 = vand.u32 %v3159_v41, %v136_v48  ;;  %v2964_v33 = vunpack.i.l.bf16 %v3416_v15  ;;  %v135_v22 = vpack.c.bf16 %v125_v8, %v125_v8  ;;  %vm4062_vm14 = vmmov %vm4059_vm6  ;;  %v609_v23 = vpop.permute.xlu0 %608 }
  0x98   :  { %v640_v31 = vsel %vm3412_vm10, %v617_v26, 0.0  ;;  %2708 = vmatmul.mubr.msk.bf16.vlgmr.msra.gmra.mrb[4].mxu1 %vm4062_vm14, %v3288_v11  ;;  %vm3457_vm11 = vcmp.lt.s32.totalorder %v38_v51, 15  ;;  %v4063_v38 = vmov 0  ;;  %vm4065_vm4 = vcmp.ge.s32.totalorder %v3163_v43, 1  ;;  %vm4068_vm10 = vmmov %vm4061_vm1  ;;  %2488 = vperm.xlu1 %3042, %v2480_v56  }
  0x99   :  { %v4064_v38 = vsel %vm3457_vm11, 4294967295, %v4063_v38  ;;  %vm3465_vm6 = vmand %vm4065_vm4, %vm3403_vm13  ;;  %v620_v37 = vsel %vm4068_vm10, %v2959_v2, %v2954_v55  ;;  %510 = vmatprep.subr.bf16.mxu0 %v416_v29  ;;  %v638_v51 = vsel %vm3428_vm2, %v619_v13, 0.0  ;;  %v137_v11 = vpack.c.bf16 %v127_v63, %v127_v63  ;;  %468 = vmatpush1.bf16.msra.mxu1 %v407_v27 }
  0x9a   :  { %v615_v44 = vsel %vm4061_vm1, %v2964_v33, %v2965_v25  ;;  %499 = vmatprep.mubr.bf16.mxu1 %v3058_v16  ;;  %vm3485_vm14 = vcmp.lt.s32.totalorder %v43_v53, 15  ;;  %v4069_v54 = vmov 0  ;;  %v649_v55 = vpack.c.bf16 %v638_v51, %v638_v51  ;;  %553 = vmatprep.subr.bf16.mxu1 %v422_v9 }
  0x9b   :  { %v4070_v54 = vsel %vm3485_vm14, 4294967295, %v4069_v54  ;;  %vm4071_vm2 = vcmp.ge.s32.totalorder %v3173_v47, 1  ;;  %v651_v21 = vpack.c.bf16 %v640_v31, %v640_v31  ;;  %vm4072_vm10 = vcmp.ge.s32.totalorder %v3188_v52, 1  ;;  %v3526_v9 = vpop.permute.xlu0 %2972 }
  0x9c   :  { %vm634_vm4 = vmand %vm4071_vm2, %vm3420_vm3  ;;  %vm4075_vm2 = vcmp.lt.s32.totalorder %v3120_v18, 15  ;;  %v637_v5 = vsel %vm3465_vm6, %v620_v37, 0.0  ;;  %v668_v48 = vand.u32 %v649_v55, %v3159_v41  ;;  %v413_v8 = vand.u32 %v3159_v41, %v135_v22 }
  0x9d   :  { %vm3503_vm1 = vmand %vm4072_vm10, %vm3457_vm11  ;;  %v618_v61 = vsel %vm4075_vm2, %v2955_v46, %v2960_v60  ;;  %vm4076_vm10 = vcmp.ge.s32.totalorder %v3153_v36, 1  ;;  %v642_v46 = vsel %vm634_vm4, %v615_v44, 0.0  ;;  %v419_v60 = vand.u32 %v3159_v41, %v137_v11 }
  0x9e   :  { %vm636_vm11 = vmand %vm4076_vm10, %vm3485_vm14  ;;  %vm4078_vm6 = vcmask 23552   ;;  %v2970_v13 = vunpack.i.h.bf16 %v3512_v24  ;;  %v2969_v63 = vunpack.i.l.bf16 %v3512_v24  ;;  %v639_v26 = vsel %vm3503_vm1, %v618_v61, 0.0 }
  0x9f   :  { %vm4077_vm3 = vmmov %vm4075_vm2  ;;  %2710 = vmatmul.mubr.msk.bf16.vlgmr.msra.gmra.mrb[0].mxu0 %vm4078_vm6, %v3474_v28  ;;  %v648_v29 = vpack.c.bf16 %v637_v5, %v637_v5  ;;  %vm3535_vm4 = vcmp.lt.s32.totalorder %v40_v58, 15  ;;  %v653_v12 = vpack.c.bf16 %v642_v46, %v642_v46  ;;  %vm3543_vm1 = vcmp.lt.s32.totalorder %v42_v59, 15  ;;  %v883_v58 = vpop.permute.xlu1 %882 }
  0xa0   :  { %v613_v27 = vsel %vm4077_vm3, %v609_v23, %v2959_v2  ;;  %511 = vmatpush1.bf16.msra.mxu0 %v413_v8  ;;  %542 = vmatprep.mubr.bf16.mxu0 %v3058_v16  ;;  %v674_v2 = vand.u32 %v651_v21, %v3159_v41  ;;  %vm4005_vm3 = vcmp.lt.s32.totalorder %v3120_v18, 1  ;;  %vm4081_vm2 = vmmov %vm4078_vm6  ;;  %v2975_v51 = vunpack.i.h.bf16 %v3526_v9 }
  0xa1   :  { %v644_v22 = vsel %vm636_vm11, %v613_v27, 0.0  ;;  %688 = vmatprep.subr.bf16.mxu0 %v668_v48  ;;  %2711 = vmatmul.mubr.msk.bf16.vlgmr.msra.gmra.mrb[0].mxu1 %vm4081_vm2, %v3474_v28  ;;  %v650_v11 = vpack.c.bf16 %v639_v26, %v639_v26  ;;  %v899_v19 = vsel %vm4005_vm3, %v2969_v63, %v2970_v13  ;;  %vm4084_vm11 = vcmp.ge.s32.totalorder %v3149_v34, 1 }
  0xa2   :  { %554 = vmatpush1.bf16.msra.mxu1 %v419_v60  ;;  %585 = vmatprep.mubr.bf16.mxu1 %v3058_v16  ;;  %vm633_vm10 = vmand %vm4084_vm11, %vm3535_vm4  ;;  %vm4085_vm6 = vcmp.lt.s32.totalorder %v3120_v18, 15  ;;  %v655_v59 = vpack.c.bf16 %v644_v22, %v644_v22  ;;  %v665_v44 = vand.u32 %v648_v29, %v3159_v41  ;;  %vm4086_vm2 = vcmp.ge.s32.totalorder %v3151_v35, 1  ;;  %v3045_v29 = vld [vmem:[%s3979_s1 + $0x10] sm:$0xff]  }
  0xa3   :  { %v616_v20 = vsel %vm4085_vm6, %v3439_v10, %v2964_v33  ;;  %731 = vmatprep.subr.bf16.mxu1 %v674_v2  ;;  %vm635_vm14 = vmand %vm4086_vm2, %vm3543_vm1  ;;  %v680_v14 = vand.u32 %v653_v12, %v3159_v41  ;;  %v2974_v56 = vunpack.i.l.bf16 %v3526_v9  ;;  %vm4088_vm11 = vcmp.lt.s32.totalorder %v3120_v18, 1  ;;  %v2978_v33 = vpop.permute.xlu0 %2977  ;;  %v889_v2 = vpop.permute.xlu1 %888 }
  0xa4   :  { %vm4087_vm3 = vmmov %vm4085_vm6  ;;  %v897_v10 = vsel %vm4088_vm11, %v2975_v51, %v883_v58  ;;  %v902_v21 = vsel %vm3177_vm7, %v899_v19, 0.0  ;;  %v641_v53 = vsel %vm633_vm10, %v616_v20, 0.0  ;;  %vm4089_vm6 = vcmask 23552  }
  0xa5   :  { %v614_v55 = vsel %vm4087_vm3, %v2965_v25, %v609_v23  ;;  %v671_v15 = vand.u32 %v650_v11, %v3159_v41  ;;  %v2980_v61 = vunpack.i.h.bf16 %v2978_v33  ;;  %v686_v25 = vand.u32 %v655_v59, %v3159_v41  ;;  %vm4090_vm3 = vmmov %vm4089_vm6 }
  0xa6   :  { %v643_v5 = vsel %vm635_vm14, %v614_v55, 0.0  ;;  %v3066_v23 = vmov 1983009808   ;;  %v904_v24 = vsel %vm3196_vm12, %v897_v10, 0.0  ;;  %v2979_v8 = vunpack.i.l.bf16 %v2978_v33  ;;  %vm4091_vm10 = vmmov %vm4088_vm11 }
  0xa7   :  { %2712 = vmatmul.mubr.msk.bf16.vlgmr.msra.gmra.mrb[4].mxu0 %vm4089_vm6, %v3474_v28  ;;  %v1152_v48 = vunpack.c.l.s4 %v3066_v23  ;;  %v913_v27 = vpack.c.bf16 %v902_v21, %v902_v21  ;;  %v652_v46 = vpack.c.bf16 %v641_v53, %v641_v53  ;;  %v900_v60 = vsel %vm4091_vm10, %v2974_v56, %v2969_v63  ;;  %vm4092_vm14 = vmmov %vm4091_vm10 }
  0xa8   :  { %689 = vmatpush1.bf16.msra.mxu0 %v665_v44  ;;  %720 = vmatprep.mubr.bf16.mxu0 %v3058_v16  ;;  %v654_v9 = vpack.c.bf16 %v643_v5, %v643_v5  ;;  %v895_v26 = vsel %vm4092_vm14, %v2979_v8, %v2980_v61  ;;  %v915_v22 = vpack.c.bf16 %v904_v24, %v904_v24  ;;  %vm4093_vm2 = vmmov %vm4091_vm10  ;;  %v901_v63 = vsel %vm3183_vm8, %v900_v60, 0.0 }
  0xa9   :  { %774 = vmatprep.subr.bf16.mxu0 %v680_v14  ;;  %2713 = vmatmul.mubr.msk.bf16.vlgmr.msra.gmra.mrb[4].mxu1 %vm4090_vm3, %v3474_v28  ;;  %v1153_v12 = vunpack.c.0.s8 %v1152_v48  ;;  %v898_v28 = vsel %vm4093_vm2, %v2970_v13, %v2975_v51  ;;  %v932_v11 = vand.u32 %v913_v27, %v3159_v41  ;;  %v1155_v19 = vshrl.u32 %v27_v17, 7  ;;  %vm4094_vm11 = vmmov %vm4093_vm2 }
  0xaa   :  { %732 = vmatpush1.bf16.msra.mxu1 %v671_v15  ;;  %763 = vmatprep.mubr.bf16.mxu1 %v3058_v16  ;;  %v677_v20 = vand.u32 %v652_v46, %v3159_v41  ;;  %v893_v59 = vsel %vm4094_vm11, %v889_v2, %v2974_v56  ;;  %v906_v44 = vsel %vm3273_vm9, %v895_v26, 0.0  ;;  %v683_v55 = vand.u32 %v654_v9, %v3159_v41  ;;  %vm4095_vm6 = vmmov %vm4090_vm3  ;;  %v3046_v9 = vld [vmem:[%s3979_s1 + $0x18] sm:$0xff]  }
  0xab   :  { %817 = vmatprep.subr.bf16.mxu1 %v686_v25  ;;  %v903_v13 = vsel %vm3210_vm15, %v898_v28, 0.0  ;;  %v912_v51 = vpack.c.bf16 %v901_v63, %v901_v63  ;;  %v938_v17 = vand.u32 %v915_v22, %v3159_v41  ;;  %v908_v14 = vsel %vm3216_vm0, %v893_v59, 0.0  ;;  %vm4096_vm10 = vmmov %vm4093_vm2 }
  0xac   :  { %v917_v56 = vpack.c.bf16 %v906_v44, %v906_v44  ;;  %v1156_v10 = vsub.s32 %v1153_v12, %v1155_v19  ;;  %v914_v33 = vpack.c.bf16 %v903_v13, %v903_v13  ;;  %v896_v21 = vsel %vm4096_vm10, %v883_v58, %v2979_v8  ;;  %vm4097_vm14 = vmmov %vm4093_vm2  ;;  %v2983_v12 = vpop.permute.xlu0 %2982 }
  0xad   :  { %v919_v53 = vpack.c.bf16 %v908_v14, %v908_v14  ;;  %v929_v15 = vand.u32 %v912_v51, %v3159_v41  ;;  %v1150_v5 = vcombine.high %v3104_v0, %v3104_v0  ;;  %v894_v25 = vsel %vm4097_vm14, %v2980_v61, %v889_v2  ;;  %vm4099_vm11 = vmmov %vm4090_vm3 }
  0xae   :  { %v944_v23 = vand.u32 %v917_v56, %v3159_v41  ;;  %v1157_v48 = vrot.slane %v3104_v0, %v1156_v10  ;;  %vm4098_vm2 = vnez %v4034_v7  ;;  %v935_v58 = vand.u32 %v914_v33, %v3159_v41  ;;  %vm4101_vm10 = vmmov %vm4090_vm3 }
  0xaf   :  { %2717 = vmatmul.mubr.msk.bf16.vlgmr.msra.gmra.mrb[0].mxu0 %vm4095_vm6, %v3045_v29  ;;  %v905_v24 = vsel %vm4098_vm2, %v896_v21, 0.0  ;;  %vm4100_vm6 = vnez %v4038_v32  ;;  %v950_v27 = vand.u32 %v919_v53, %v3159_v41  ;;  %v1164_v61 = vrot.slane %v1150_v5, %v1156_v10 }
  0xb0   :  { %775 = vmatpush1.bf16.msra.mxu0 %v677_v20  ;;  %806 = vmatprep.mubr.bf16.mxu0 %v3058_v16  ;;  %v907_v8 = vsel %vm4100_vm6, %v894_v25, 0.0  ;;  %v1165_v46 = vcombine.high %v1157_v48, %v1157_v48  ;;  %v916_v60 = vpack.c.bf16 %v905_v24, %v905_v24  ;;  %v1167_v2 = vcombine.high %v3109_v1, %v3109_v1  ;;  %v2988_v20 = vpop.permute.xlu1 %2987  ;;  %v1408_v51 = vpop.permute.xlu0 %1407 }
  0xb1   :  { %952 = vmatprep.subr.bf16.mxu0 %v932_v11  ;;  %2718 = vmatmul.mubr.msk.bf16.vlgmr.msra.gmra.mrb[0].mxu1 %vm4090_vm3, %v3045_v29  ;;  %v918_v0 = vpack.c.bf16 %v907_v8, %v907_v8  ;;  %v1166_v26 = vcombine.high %v1164_v61, %v1164_v61  ;;  %v1174_v28 = vrot.slane %v3109_v1, %v1156_v10  ;;  %v2985_v11 = vunpack.i.h.bf16 %v2983_v12 }
  0xb2   :  { %818 = vmatpush1.bf16.msra.mxu1 %v683_v55  ;;  %849 = vmatprep.mubr.bf16.mxu1 %v3058_v16  ;;  %v1191_v22 = vand.u32 %v1165_v46, %v3159_v41  ;;  %v2984_v19 = vunpack.i.l.bf16 %v2983_v12  ;;  %vm4007_vm14 = vcmp.lt.s32.totalorder %v3120_v18, 127  ;;  %v1181_v44 = vrot.slane %v1167_v2, %v1156_v10 }
  0xb3   :  { %995 = vmatprep.subr.bf16.mxu1 %v938_v17  ;;  %v947_v63 = vand.u32 %v918_v0, %v3159_v41  ;;  %v1197_v59 = vand.u32 %v1166_v26, %v3159_v41  ;;  %v1182_v55 = vcombine.high %v1174_v28, %v1174_v28  ;;  %v2990_v1 = vunpack.i.h.bf16 %v2988_v20 }
  0xb4   :  { %v1421_v13 = vsel %vm4007_vm14, %v2984_v19, %v2985_v11  ;;  %v1188_v17 = vand.u32 %v1157_v48, %v3159_v41  ;;  %v1183_v14 = vcombine.high %v1181_v44, %v1181_v44  ;;  %v2989_v33 = vunpack.i.l.bf16 %v2988_v20  ;;  %v2993_v21 = vpop.permute.xlu1 %2992 }
  0xb5   :  { %v1203_v56 = vand.u32 %v1182_v55, %v3159_v41  ;;  %v1419_v10 = vsel %vm4007_vm14, %v2990_v1, %v1408_v51  ;;  %v1425_v53 = vsel %vm3345_vm5, %v1421_v13, 0.0  ;;  %v2995_v5 = vunpack.i.h.bf16 %v2993_v21 }
  0xb6   :  { %v1209_v25 = vand.u32 %v1183_v14, %v3159_v41  ;;  %v2994_v48 = vunpack.i.l.bf16 %v2993_v21  ;;  %v1436_v24 = vpack.c.bf16 %v1425_v53, %v1425_v53  ;;  %v1420_v0 = vsel %vm4007_vm14, %v2985_v11, %v2990_v1 }
  0xb7   :  { %2719 = vmatmul.mubr.msk.bf16.vlgmr.msra.gmra.mrb[4].mxu0 %vm4099_vm11, %v3045_v29  ;;  %vm4102_vm11 = vmmov %vm4090_vm3 }
  0xb8   :  { %953 = vmatpush1.bf16.msra.mxu0 %v929_v15  ;;  %984 = vmatprep.mubr.bf16.mxu0 %v3058_v16  ;;  %v1194_v15 = vand.u32 %v1164_v61, %v3159_v41  ;;  %v1417_v8 = vsel %vm4007_vm14, %v2994_v48, %v2995_v5  ;;  %v1414_v61 = vpop.permute.xlu0 %1413  ;;  %v1455_v26 = vand.u32 %v1436_v24, %v3159_v41  ;;  %v3676_v2 = vpop.permute.xlu1 %2997 }
  0xb9   :  { %1038 = vmatprep.subr.bf16.mxu0 %v944_v23  ;;  %2720 = vmatmul.mubr.msk.bf16.vlgmr.msra.gmra.mrb[4].mxu1 %vm4090_vm3, %v3045_v29  ;;  %v941_v29 = vand.u32 %v916_v60, %v3159_v41  ;;  %v1200_v60 = vand.u32 %v1174_v28, %v3159_v41  ;;  %v1206_v28 = vand.u32 %v1181_v44, %v3159_v41 }
  0xba   :  { %996 = vmatpush1.bf16.msra.mxu1 %v935_v58  ;;  %1027 = vmatprep.mubr.bf16.mxu1 %v3058_v16  ;;  %v1422_v58 = vsel %vm4007_vm14, %v2989_v33, %v2984_v19 }
  0xbb   :  { %1081 = vmatprep.subr.bf16.mxu1 %v950_v27  ;;  %v3667_v27 = vld [vmem:[%s3979_s1 + $0x20] sm:$0xff]  }
  0xbc   :  { %v3688_v11 = vpop.permute.xlu0 %3002  ;;  %v3706_v14 = vpop.permute.xlu1 %1671 }
  0xbd   :  { %v3005_v1 = vunpack.i.h.bf16 %v3688_v11 }
  0xbf   :  { %2724 = vmatmul.mubr.msk.bf16.vlgmr.msra.gmra.mrb[0].mxu0 %vm4101_vm10, %v3046_v9  ;;  %vm4103_vm10 = vnez %v4042_v40 }
  0xc0   :  { %1039 = vmatpush1.bf16.msra.mxu0 %v941_v29  ;;  %1070 = vmatprep.mubr.bf16.mxu0 %v3058_v16  ;;  %v1427_v23 = vsel %vm4103_vm10, %v1419_v10, 0.0  ;;  %v3000_v29 = vunpack.i.h.bf16 %v3676_v2  ;;  %v1678_v50 = vpop.permute.xlu1 %1677 }
  0xc1   :  { %1211 = vmatprep.subr.bf16.mxu0 %v1191_v22  ;;  %2725 = vmatmul.mubr.msk.bf16.vlgmr.msra.gmra.mrb[0].mxu1 %vm4102_vm11, %v3046_v9  ;;  %vm4104_vm11 = vmmov %vm4090_vm3  ;;  %v1438_v46 = vpack.c.bf16 %v1427_v23, %v1427_v23  ;;  %v1423_v22 = vsel %vm4007_vm14, %v1414_v61, %v2989_v33  ;;  %vm4009_vm14 = vcmp.lt.s32.totalorder %v3120_v18, 113 }
  0xc2   :  { %1082 = vmatpush1.bf16.msra.mxu1 %v947_v63  ;;  %1113 = vmatprep.mubr.bf16.mxu1 %v3058_v16  ;;  %vm4106_vm10 = vmmov %vm4104_vm11  ;;  %v2999_v63 = vunpack.i.l.bf16 %v3676_v2 }
  0xc3   :  { %1254 = vmatprep.subr.bf16.mxu1 %v1197_v59  ;;  %v1461_v59 = vand.u32 %v1438_v46, %v3159_v41 }
  0xc7   :  { %2726 = vmatmul.mubr.msk.bf16.vlgmr.msra.gmra.mrb[4].mxu0 %vm4090_vm3, %v3046_v9  ;;  %vm4105_vm3 = vnez %v4055_v39 }
  0xc8   :  { %1212 = vmatpush1.bf16.msra.mxu0 %v1188_v17  ;;  %1243 = vmatprep.mubr.bf16.mxu0 %v3058_v16  ;;  %v1429_v12 = vsel %vm4105_vm3, %v1417_v8, 0.0  ;;  %v1685_v17 = vsel %vm4009_vm14, %v2999_v63, %v3000_v29  ;;  %vm4110_vm3 = vcmp.lt.s32.totalorder %v3120_v18, 127 }
  0xc9   :  { %1297 = vmatprep.subr.bf16.mxu0 %v1203_v56  ;;  %2727 = vmatmul.mubr.msk.bf16.vlgmr.msra.gmra.mrb[4].mxu1 %vm4104_vm11, %v3046_v9  ;;  %v1424_v9 = vsel %vm3403_vm13, %v1422_v58, 0.0  ;;  %vm4107_vm13 = vnez %v4064_v38  ;;  %v1440_v55 = vpack.c.bf16 %v1429_v12, %v1429_v12  ;;  %v1418_v56 = vsel %vm4110_vm3, %v1408_v51, %v2994_v48  ;;  %vm4111_vm5 = vmmov %vm4110_vm3  ;;  %v3726_v51 = vpop.permute.xlu0 %3007 }
  0xca   :  { %1255 = vmatpush1.bf16.msra.mxu1 %v1194_v15  ;;  %1286 = vmatprep.mubr.bf16.mxu1 %v3058_v16  ;;  %v1426_v19 = vsel %vm4107_vm13, %v1420_v0, 0.0  ;;  %v1435_v20 = vpack.c.bf16 %v1424_v9, %v1424_v9  ;;  %vm1691_vm13 = vcmp.lt.s32.totalorder %v3167_v45, 15  ;;  %v1416_v21 = vsel %vm4111_vm5, %v2995_v5, %v1414_v61 }
  0xcb   :  { %1340 = vmatprep.subr.bf16.mxu1 %v1209_v25  ;;  %v1437_v13 = vpack.c.bf16 %v1426_v19, %v1426_v19  ;;  %v1467_v53 = vand.u32 %v1440_v55, %v3159_v41  ;;  %v3004_v15 = vunpack.i.l.bf16 %v3688_v11  ;;  %vm1699_vm14 = vmand %vm1691_vm13, %vm3196_vm12  ;;  %vm1688_vm3 = vcmp.lt.s32.totalorder %v3163_v43, 15 }
  0xcc   :  { %v1452_v10 = vand.u32 %v1435_v20, %v3159_v41  ;;  %v1428_v5 = vsel %vm3535_vm4, %v1418_v56, 0.0  ;;  %vm4113_vm5 = vcmask 23552   ;;  %v3010_v23 = vunpack.i.h.bf16 %v3726_v51  ;;  %v3018_v20 = vpop.permute.xlu1 %3017 }
  0xcd   :  { %v1458_v57 = vand.u32 %v1437_v13, %v3159_v41  ;;  %v1430_v48 = vsel %vm3543_vm1, %v1416_v21, 0.0  ;;  %vm4010_vm12 = vcmp.lt.s32.totalorder %v3173_v47, 15  ;;  %v3009_v8 = vunpack.i.l.bf16 %v3726_v51 }
  0xce   :  { %v1439_v46 = vpack.c.bf16 %v1428_v5, %v1428_v5  ;;  %v1441_v0 = vpack.c.bf16 %v1430_v48, %v1430_v48  ;;  %v3020_v13 = vunpack.i.h.bf16 %v3018_v20 }
  0xcf   :  { %2731 = vmatmul.mubr.msk.bf16.vlgmr.msra.gmra.mrb[0].mxu0 %vm4106_vm10, %v3667_v27  ;;  %vm4108_vm10 = vnez %v4070_v54 }
  0xd0   :  { %1298 = vmatpush1.bf16.msra.mxu0 %v1200_v60  ;;  %1329 = vmatprep.mubr.bf16.mxu0 %v3058_v16  ;;  %v1431_v44 = vsel %vm4108_vm10, %v1423_v22, 0.0  ;;  %vm4109_vm10 = vcmp.lt.s32.totalorder %v3161_v42, 15  ;;  %v1464_v6 = vand.u32 %v1439_v46, %v3159_v41  ;;  %v1470_v2 = vand.u32 %v1441_v0, %v3159_v41 }
  0xd1   :  { %1475 = vmatprep.subr.bf16.mxu0 %v1455_v26  ;;  %2732 = vmatmul.mubr.msk.bf16.vlgmr.msra.gmra.mrb[0].mxu1 %vm4104_vm11, %v3667_v27  ;;  %vm1697_vm11 = vmand %vm4109_vm10, %vm3177_vm7  ;;  %v1442_v33 = vpack.c.bf16 %v1431_v44, %v1431_v44  ;;  %vm4112_vm7 = vcmp.lt.s32.totalorder %v3120_v18, 113  ;;  %vm1690_vm10 = vcmp.lt.s32.totalorder %v3188_v52, 15  ;;  %v3757_v26 = vld [vmem:[%s3979_s1 + $0x28] sm:$0xff]  }
  0xd2   :  { %1341 = vmatpush1.bf16.msra.mxu1 %v1206_v28  ;;  %1372 = vmatprep.mubr.bf16.mxu1 %v3058_v16  ;;  %v1683_v49 = vsel %vm4112_vm7, %v3005_v1, %v3706_v14  ;;  %v1705_v25 = vsel %vm1697_vm11, %v1685_v17, 0.0  ;;  %vm4114_vm11 = vmmov %vm4113_vm5 }
  0xd3   :  { %1518 = vmatprep.subr.bf16.mxu1 %v1461_v59  ;;  %v1473_v24 = vand.u32 %v1442_v33, %v3159_v41  ;;  %v1707_v58 = vsel %vm1699_vm14, %v1683_v49, 0.0  ;;  %v1716_v61 = vpack.c.bf16 %v1705_v25, %v1705_v25  ;;  %vm1696_vm7 = vmand %vm1688_vm3, %vm3183_vm8  ;;  %v3019_v49 = vunpack.i.l.bf16 %v3018_v20  ;;  %v3023_v25 = vpop.permute.xlu1 %3022 }
  0xd4   :  { %vm1701_vm8 = vmand %vm4010_vm12, %vm3273_vm9 }
  0xd5   :  { %v1735_v28 = vand.u32 %v1716_v61, %v3159_v41 }
  0xd7   :  { %2733 = vmatmul.mubr.msk.bf16.vlgmr.msra.gmra.mrb[4].mxu0 %vm4113_vm5, %v3667_v27  ;;  %vm4115_vm5 = vcmp.lt.s32.totalorder %v3120_v18, 113 }
  0xd8   :  { %1476 = vmatpush1.bf16.msra.mxu0 %v1452_v10  ;;  %1507 = vmatprep.mubr.bf16.mxu0 %v3058_v16  ;;  %v1686_v60 = vsel %vm4115_vm5, %v3004_v15, %v2999_v63  ;;  %vm4116_vm14 = vmmov %vm4115_vm5  ;;  %v3774_v63 = vpop.permute.xlu0 %3012 }
  0xd9   :  { %1561 = vmatprep.subr.bf16.mxu0 %v1467_v53  ;;  %2734 = vmatmul.mubr.msk.bf16.vlgmr.msra.gmra.mrb[4].mxu1 %vm4114_vm11, %v3667_v27  ;;  %v1681_v9 = vsel %vm4116_vm14, %v3009_v8, %v3010_v23  ;;  %vm1695_vm11 = vcmp.lt.s32.totalorder %v3153_v36, 15  ;;  %v1718_v27 = vpack.c.bf16 %v1707_v58, %v1707_v58  ;;  %vm1698_vm5 = vmand %vm1690_vm10, %vm3210_vm15  ;;  %v1684_v22 = vsel %vm4116_vm14, %v3000_v29, %v3005_v1 }
  0xda   :  { %1519 = vmatpush1.bf16.msra.mxu1 %v1458_v57  ;;  %1550 = vmatprep.mubr.bf16.mxu1 %v3058_v16  ;;  %v1704_v12 = vsel %vm1696_vm7, %v1686_v60, 0.0  ;;  %vm1703_vm9 = vmand %vm1695_vm11, %vm3216_vm0  ;;  %v1709_v11 = vsel %vm1701_vm8, %v1681_v9, 0.0  ;;  %vm4118_vm15 = vcmask 23552   ;;  %v3015_v29 = vunpack.i.h.bf16 %v3774_v63  ;;  %v3051_v9 = vld [vmem:[%s3979_s1 + $0x30] sm:$0xff]  }
  0xdb   :  { %1604 = vmatprep.subr.bf16.mxu1 %v1473_v24  ;;  %vm4117_vm12 = vmmov %vm4116_vm14  ;;  %v3014_v19 = vunpack.i.l.bf16 %v3774_v63  ;;  %v1706_v59 = vsel %vm1698_vm5, %v1684_v22, 0.0  ;;  %v1715_v44 = vpack.c.bf16 %v1704_v12, %v1704_v12  ;;  %v1741_v4 = vand.u32 %v1718_v27, %v3159_v41 }
  0xdc   :  { %v1687_v3 = vsel %vm4117_vm12, %v1678_v50, %v3004_v15  ;;  %vm1959_vm0 = vcmp.lt.s32.totalorder %v3120_v18, 112  ;;  %vm1692_vm12 = vcmp.lt.s32.totalorder %v3149_v34, 15  ;;  %v1720_v1 = vpack.c.bf16 %v1709_v11, %v1709_v11  ;;  %vm4119_vm7 = vmmov %vm4118_vm15  ;;  %v3798_v33 = vpop.permute.xlu0 %1951 }
  0xdd   :  { %v1711_v55 = vsel %vm1703_vm9, %v1687_v3, 0.0  ;;  %vm1694_vm8 = vcmp.lt.s32.totalorder %v3151_v35, 15  ;;  %v1717_v17 = vpack.c.bf16 %v1706_v59, %v1706_v59  ;;  %v1965_v56 = vsel %vm1959_vm0, %v3014_v19, %v3015_v29  ;;  %vm1700_vm5 = vmand %vm1692_vm12, %vm4098_vm2 }
  0xde   :  { %v1682_v10 = vsel %vm4116_vm14, %v3706_v14, %v3009_v8  ;;  %v1722_v21 = vpack.c.bf16 %v1711_v55, %v1711_v55  ;;  %v1732_v53 = vand.u32 %v1715_v44, %v3159_v41  ;;  %vm1702_vm9 = vmand %vm1694_vm8, %vm4100_vm6  ;;  %v1747_v15 = vand.u32 %v1720_v1, %v3159_v41 }
  0xdf   :  { %2738 = vmatmul.mubr.msk.bf16.vlgmr.msra.gmra.mrb[0].mxu0 %vm4118_vm15, %v3757_v26  ;;  %vm4120_vm15 = vmmov %vm4116_vm14  ;;  %v1963_v14 = vsel %vm1959_vm0, %v3020_v13, %v3798_v33  ;;  %vm4121_vm2 = vcmp.lt.s32.totalorder %v3161_v42, 15  ;;  %v1708_v32 = vsel %vm1700_vm5, %v1682_v10, 0.0  ;;  %v1738_v51 = vand.u32 %v1717_v17, %v3159_v41 }
  0xe0   :  { %1562 = vmatpush1.bf16.msra.mxu0 %v1464_v6  ;;  %1593 = vmatprep.mubr.bf16.mxu0 %v3058_v16  ;;  %v1680_v7 = vsel %vm4120_vm15, %v3010_v23, %v1678_v50  ;;  %v1969_v5 = vsel %vm4121_vm2, %v1965_v56, 0.0  ;;  %v3025_v57 = vunpack.i.h.bf16 %v3023_v25  ;;  %v1753_v23 = vand.u32 %v1722_v21, %v3159_v41  ;;  %vm4122_vm6 = vmmov %vm4119_vm7  ;;  %v1958_v50 = vpop.permute.xlu0 %1957 }
  0xe1   :  { %1755 = vmatprep.subr.bf16.mxu0 %v1735_v28  ;;  %2739 = vmatmul.mubr.msk.bf16.vlgmr.msra.gmra.mrb[0].mxu1 %vm4119_vm7, %v3757_v26  ;;  %v1710_v48 = vsel %vm1702_vm9, %v1680_v7, 0.0  ;;  %v1971_v24 = vsel %vm1691_vm13, %v1963_v14, 0.0  ;;  %v3024_v58 = vunpack.i.l.bf16 %v3023_v25  ;;  %v1980_v8 = vpack.c.bf16 %v1969_v5, %v1969_v5  ;;  %v3844_v28 = vpop.permute.xlu1 %3027  ;;  %vm4124_vm14 = vmmov %vm4122_vm6 }
  0xe2   :  { %1605 = vmatpush1.bf16.msra.mxu1 %v1470_v2  ;;  %1636 = vmatprep.mubr.bf16.mxu1 %v3058_v16  ;;  %v1719_v61 = vpack.c.bf16 %v1708_v32, %v1708_v32  ;;  %v1966_v46 = vsel %vm1959_vm0, %v3019_v49, %v3014_v19  ;;  %v1721_v60 = vpack.c.bf16 %v1710_v48, %v1710_v48  ;;  %vm4123_vm5 = vcmp.lt.s32.totalorder %v3173_v47, 15  ;;  %vm4125_vm15 = vmmov %vm4122_vm6 }
  0xe3   :  { %1798 = vmatprep.subr.bf16.mxu1 %v1741_v4  ;;  %v1961_v0 = vsel %vm1959_vm0, %v3024_v58, %v3025_v57  ;;  %v1982_v27 = vpack.c.bf16 %v1971_v24, %v1971_v24  ;;  %v1968_v22 = vsel %vm1688_vm3, %v1966_v46, 0.0  ;;  %v1999_v12 = vand.u32 %v1980_v8, %v3159_v41  ;;  %v3052_v8 = vld [vmem:[%s3979_s1 + $0x38] sm:$0xff]  }
  0xe4   :  { %v1744_v63 = vand.u32 %v1719_v61, %v3159_v41  ;;  %v1967_v6 = vsel %vm1959_vm0, %v1958_v50, %v3019_v49  ;;  %v1973_v3 = vsel %vm4123_vm5, %v1961_v0, 0.0  ;;  %v1750_v11 = vand.u32 %v1721_v60, %v3159_v41  ;;  %v3033_v19 = vpop.permute.xlu0 %3032 }
  0xe5   :  { %v3030_v2 = vunpack.i.h.bf16 %v3844_v28  ;;  %v1979_v59 = vpack.c.bf16 %v1968_v22, %v1968_v22  ;;  %v2005_v44 = vand.u32 %v1982_v27, %v3159_v41  ;;  %vm2223_vm9 = vcmp.lt.s32.totalorder %v3120_v18, 111  ;;  %v2216_v56 = vpop.permute.xlu1 %2215 }
  0xe6   :  { %v1975_v4 = vsel %vm1695_vm11, %v1967_v6, 0.0  ;;  %v1984_v55 = vpack.c.bf16 %v1973_v3, %v1973_v3  ;;  %v3035_v1 = vunpack.i.h.bf16 %v3033_v19  ;;  %vm4126_vm2 = vnez %v4036_v30 }
  0xe7   :  { %2740 = vmatmul.mubr.msk.bf16.vlgmr.msra.gmra.mrb[4].mxu0 %vm4119_vm7, %v3757_v26  ;;  %vm4127_vm7 = vcmp.lt.s32.totalorder %v3161_v42, 15  ;;  %v1962_v10 = vsel %vm1959_vm0, %v3798_v33, %v3024_v58  ;;  %v1986_v21 = vpack.c.bf16 %v1975_v4, %v1975_v4  ;;  %v1960_v7 = vsel %vm1959_vm0, %v3025_v57, %v1958_v50 }
  0xe8   :  { %1756 = vmatpush1.bf16.msra.mxu0 %v1732_v53  ;;  %1787 = vmatprep.mubr.bf16.mxu0 %v3058_v16  ;;  %v1996_v53 = vand.u32 %v1979_v59, %v3159_v41  ;;  %v3034_v49 = vunpack.i.l.bf16 %v3033_v19  ;;  %vm4128_vm5 = vnez %v4042_v40  ;;  %v2227_v42 = vsel %vm2223_vm9, %v3035_v1, %v2216_v56  ;;  %v3038_v30 = vpop.permute.xlu0 %3037 }
  0xe9   :  { %1841 = vmatprep.subr.bf16.mxu0 %v1747_v15  ;;  %2741 = vmatmul.mubr.msk.bf16.vlgmr.msra.gmra.mrb[4].mxu1 %vm4122_vm6, %v3757_v26  ;;  %v1964_v26 = vsel %vm1959_vm0, %v3015_v29, %v3020_v13  ;;  %v3029_v29 = vunpack.i.l.bf16 %v3844_v28  ;;  %vm2233_vm6 = vmand %vm4127_vm7, %vm4126_vm2  ;;  %v2011_v15 = vand.u32 %v1984_v55, %v3159_v41  ;;  %v1972_v14 = vsel %vm1692_vm12, %v1962_v10, 0.0  ;;  %v2222_v61 = vpop.permute.xlu1 %2221 }
  0xea   :  { %1799 = vmatpush1.bf16.msra.mxu1 %v1738_v51  ;;  %1830 = vmatprep.mubr.bf16.mxu1 %v3058_v16  ;;  %v1970_v20 = vsel %vm1690_vm10, %v1964_v26, 0.0  ;;  %v3040_v5 = vunpack.i.h.bf16 %v3038_v30  ;;  %v1974_v32 = vsel %vm1694_vm8, %v1960_v7, 0.0  ;;  %v2017_v45 = vand.u32 %v1986_v21, %v3159_v41 }
  0xeb   :  { %1884 = vmatprep.subr.bf16.mxu1 %v1753_v23  ;;  %v1981_v13 = vpack.c.bf16 %v1970_v20, %v1970_v20  ;;  %v2229_v17 = vsel %vm2223_vm9, %v3029_v29, %v3030_v2  ;;  %v3039_v51 = vunpack.i.l.bf16 %v3038_v30  ;;  %v1983_v48 = vpack.c.bf16 %v1972_v14, %v1972_v14 }
  0xec   :  { %v2241_v33 = vsel %vm2233_vm6, %v2229_v17, 0.0  ;;  %vm4130_vm0 = vnez %v4050_v62  ;;  %v2230_v23 = vsel %vm2223_vm9, %v3034_v49, %v3029_v29  ;;  %v1985_v24 = vpack.c.bf16 %v1974_v32, %v1974_v32 }
  0xed   :  { %v2002_v25 = vand.u32 %v1981_v13, %v3159_v41  ;;  %v2252_v57 = vpack.c.bf16 %v2241_v33, %v2241_v33  ;;  %vm2232_vm2 = vmand %vm1688_vm3, %vm4130_vm0  ;;  %v2225_v58 = vsel %vm2223_vm9, %v3039_v51, %v3040_v5  ;;  %vm4131_vm7 = vnez %v4055_v39 }
  0xee   :  { %vm4132_vm6 = vcmp.lt.s32.totalorder %v3173_v47, 15  ;;  %v2228_v62 = vsel %vm2223_vm9, %v3030_v2, %v3035_v1  ;;  %v2240_v46 = vsel %vm2232_vm2, %v2230_v23, 0.0  ;;  %v2008_v0 = vand.u32 %v1983_v48, %v3159_v41  ;;  %vm2238_vm2 = vmand %vm1694_vm8, %vm3543_vm1 }
  0xef   :  { %2745 = vmatmul.mubr.msk.bf16.vlgmr.msra.gmra.mrb[0].mxu0 %vm4124_vm14, %v3051_v9  ;;  %vm2235_vm14 = vmand %vm1691_vm13, %vm4128_vm5  ;;  %vm4133_vm5 = vnez %v4064_v38  ;;  %v2271_v60 = vand.u32 %v2252_v57, %v3159_v41  ;;  %v2231_v47 = vsel %vm2223_vm9, %v2222_v61, %v3034_v49  ;;  %v2014_v52 = vand.u32 %v1985_v24, %v3159_v41 }
  0xf0   :  { %1842 = vmatpush1.bf16.msra.mxu0 %v1744_v63  ;;  %1873 = vmatprep.mubr.bf16.mxu0 %v3058_v16  ;;  %v2243_v40 = vsel %vm2235_vm14, %v2227_v42, 0.0  ;;  %vm4129_vm13 = vmmov %vm4125_vm15  ;;  %v2226_v26 = vsel %vm2223_vm9, %v2216_v56, %v3039_v51  ;;  %v2224_v28 = vsel %vm2223_vm9, %v3040_v5, %v2222_v61 }
  0xf1   :  { %2019 = vmatprep.subr.bf16.mxu0 %v1999_v12  ;;  %2746 = vmatmul.mubr.msk.bf16.vlgmr.msra.gmra.mrb[0].mxu1 %vm4125_vm15, %v3051_v9  ;;  %vm2237_vm3 = vmand %vm4132_vm6, %vm4131_vm7  ;;  %v2254_v43 = vpack.c.bf16 %v2243_v40, %v2243_v40  ;;  %v2246_v6 = vsel %vm2238_vm2, %v2224_v28, 0.0  ;;  %vm3068_vm6 = vmmov 0  }
  0xf2   :  { %1885 = vmatpush1.bf16.msra.mxu1 %v1750_v11  ;;  %1916 = vmatprep.mubr.bf16.mxu1 %v3058_v16  ;;  %vm2234_vm14 = vmand %vm1690_vm10, %vm4133_vm5  ;;  %v2245_v39 = vsel %vm2237_vm3, %v2225_v58, 0.0  ;;  %vm4135_vm10 = vcmask 23552   ;;  %v2257_v35 = vpack.c.bf16 %v2246_v6, %v2246_v6  ;;  %v3053_v11 = vld [vmem:[%s3979_s1 + $0x40] sm:$0xff]   ;;  %vm2529_vm3 = vcmp.eq.s32.totalorder %v3120_v18, 0 }
  0xf3   :  { %2062 = vmatprep.subr.bf16.mxu1 %v2005_v44  ;;  %v2242_v38 = vsel %vm2234_vm14, %v2228_v62, 0.0  ;;  %v2277_v50 = vand.u32 %v2254_v43, %v3159_v41  ;;  %vm4136_vm0 = vmmov %vm4135_vm10  ;;  %vm2538_vm5 = vcmp.eq.s32.totalorder %v3120_v18, 1  ;;  %vm2549_vm14 = vcmp.eq.s32.totalorder %v3120_v18, 2 }
  0xf4   :  { %v2253_v36 = vpack.c.bf16 %v2242_v38, %v2242_v38  ;;  %vm4137_vm7 = vmmov %vm4136_vm0  ;;  %v2286_v29 = vand.u32 %v2257_v35, %v3159_v41  ;;  %v2599_v35 = vld [vmem:[%s3981_s3] sm:$0xff] }
  0xf5   :  { %vm4139_vm1 = vmmov %vm4136_vm0 }
  0xf6   :  { %v2274_v34 = vand.u32 %v2253_v36, %v3159_v41  ;;  %vm4141_vm8 = vmmov %vm4136_vm0 }
  0xf7   :  { %2747 = vmatmul.mubr.msk.bf16.vlgmr.msra.gmra.mrb[4].mxu0 %vm4125_vm15, %v3051_v9  ;;  %vm4134_vm15 = vnez %v4070_v54  ;;  %v2256_v54 = vpack.c.bf16 %v2245_v39, %v2245_v39  ;;  %vm4142_vm9 = vmmov %vm4136_vm0 }
  0xf8   :  { %2020 = vmatpush1.bf16.msra.mxu0 %v1996_v53  ;;  %2051 = vmatprep.mubr.bf16.mxu0 %v3058_v16 }
  0xf9   :  { %2105 = vmatprep.subr.bf16.mxu0 %v2011_v15  ;;  %2748 = vmatmul.mubr.msk.bf16.vlgmr.msra.gmra.mrb[4].mxu1 %vm4129_vm13, %v3051_v9  ;;  %vm2239_vm13 = vmand %vm1695_vm11, %vm4134_vm15  ;;  %v2251_v9 = vpack.c.bf16 %v2240_v46, %v2240_v46  ;;  %v2283_v31 = vand.u32 %v2256_v54, %v3159_v41  ;;  %vm2560_vm15 = vcmp.eq.s32.totalorder %v3120_v18, 3  ;;  %v2763_v18 = vld [vmem:[%s3982_s4] ss:$0 sm:$0xff] }
  0xfa   :  { %2063 = vmatpush1.bf16.msra.mxu1 %v2002_v25  ;;  %2094 = vmatprep.mubr.bf16.mxu1 %v3058_v16  ;;  %v2247_v27 = vsel %vm2239_vm13, %v2231_v47, 0.0  ;;  %vm2236_vm11 = vmand %vm1692_vm12, %vm3535_vm4  ;;  %vm2608_vm13 = vcmask 130048  }
  0xfb   :  { %2148 = vmatprep.subr.bf16.mxu1 %v2017_v45  ;;  %v2258_v22 = vpack.c.bf16 %v2247_v27, %v2247_v27  ;;  %v2268_v12 = vand.u32 %v2251_v9, %v3159_v41  ;;  %v2244_v63 = vsel %vm2236_vm11, %v2226_v26, 0.0  ;;  %vm4138_vm4 = vmmov %vm4136_vm0  ;;  %vm2696_vm11 = vcmask 1043970  }
  0xfc   :  { %v2255_v37 = vpack.c.bf16 %v2244_v63, %v2244_v63  ;;  %vm4140_vm12 = vmmov %vm4136_vm0 }
  0xfd   :  { %v2289_v3 = vand.u32 %v2258_v22, %v3159_v41 }
  0xfe   :  { %v2280_v2 = vand.u32 %v2255_v37, %v3159_v41  ;;  %v3067_v37 = vmov 0.0|0.0  }
  0xff   :  { %2752 = vmatmul.mubr.msk.bf16.vlgmr.msra.gmra.mrb[0].mxu0 %vm4135_vm10, %v3052_v8  ;;  %vm2683_vm10 = vcmask 519168  }
 0x100   :  { %2106 = vmatpush1.bf16.msra.mxu0 %v2008_v0  ;;  %2137 = vmatprep.mubr.bf16.mxu0 %v3058_v16 }
 0x101   :  { %2291 = vmatprep.subr.bf16.mxu0 %v2271_v60  ;;  %2753 = vmatmul.mubr.msk.bf16.vlgmr.msra.gmra.mrb[0].mxu1 %vm4136_vm0, %v3052_v8  ;;  %vm2690_vm0 = vcmask 517120  }
 0x102   :  { %2149 = vmatpush1.bf16.msra.mxu1 %v2014_v52  ;;  %2180 = vmatprep.mubr.bf16.mxu1 %v3058_v16 }
 0x103   :  { %2334 = vmatprep.subr.bf16.mxu1 %v2277_v50 }
 0x107   :  { %2754 = vmatmul.mubr.msk.bf16.vlgmr.msra.gmra.mrb[4].mxu0 %vm4137_vm7, %v3052_v8 }
 0x108   :  { %2292 = vmatpush1.bf16.msra.mxu0 %v2268_v12  ;;  %2323 = vmatprep.mubr.bf16.mxu0 %v3058_v16 }
 0x109   :  { %2377 = vmatprep.subr.bf16.mxu0 %v2283_v31  ;;  %2755 = vmatmul.mubr.msk.bf16.vlgmr.msra.gmra.mrb[4].mxu1 %vm4138_vm4, %v3052_v8 }
 0x10a   :  { %2335 = vmatpush1.bf16.msra.mxu1 %v2274_v34  ;;  %2366 = vmatprep.mubr.bf16.mxu1 %v3058_v16 }
 0x10b   :  { %2420 = vmatprep.subr.bf16.mxu1 %v2289_v3 }
 0x10c   :  { %v2484_v19 = vpop.permute.xlu0 %2483 }
 0x10f   :  { %2759 = vmatmul.mubr.msk.bf16.vlgmr.msra.gmra.mrb[0].mxu0 %vm4139_vm1, %v3053_v11 }
 0x110   :  { %2378 = vmatpush1.bf16.msra.mxu0 %v2280_v2  ;;  %2409 = vmatprep.mubr.bf16.mxu0 %v3058_v16  ;;  %v3069_v2 = vmov 0.0  }
 0x111   :  { %2760 = vmatmul.mubr.msk.bf16.vlgmr.msra.gmra.mrb[0].mxu1 %vm4140_vm12, %v3053_v11  ;;  %2775 = vmatprep.subr.bf16.mxu0 %v3067_v37 }
 0x112   :  { %2421 = vmatpush1.bf16.msra.mxu1 %v2286_v29  ;;  %2452 = vmatprep.mubr.bf16.mxu1 %v3058_v16 }
 0x117   :  { %2761 = vmatmul.mubr.msk.bf16.vlgmr.msra.gmra.mrb[4].mxu0 %vm4141_vm8, %v3053_v11  ;;  %v2489_v59 = vpop.permute.xlu1 %2488 }
 0x118   :  { %2772 = vmatprep.mubr.msk.f32.mxu0 %vm3068_vm6, %v3069_v2 }
 0x119   :  { %2762 = vmatmul.mubr.msk.bf16.vlgmr.msra.gmra.mrb[4].mxu1 %vm4142_vm9, %v3053_v11  ;;  %v2600_v11 = vld [vmem:[%s3981_s3 + $0x8] sm:$0xff] }
 0x11a   :  { %v2776_v29 = vpack.c.bf16 %v2600_v11, %v2599_v35 }
 0x11c   :  { %2777 = vmatpush3.bf16.msra.mxu0 %v2776_v29 }
 0x1e2   :  { %v2325_v20 = vpop.f32.mrb[0].mxu0 }
 0x1e3   :  { %v2491_v44 = vadd.f32 %v2484_v19, %v2325_v20  ;;  %v2327_v4 = vpop.f32.mrb[1].mxu0 }
 0x1e4   :  { %v2492_v41 = vadd.f32 %v2484_v19, %v2327_v4  ;;  %v2329_v55 = vpop.f32.mrb[2].mxu0  ;;  %v2368_v13 = vpop.f32.mrb[0].mxu1 }
 0x1e5   :  { %v2507_v1 = vmax.f32 %v2491_v44, 0.0  ;;  %v2499_v17 = vadd.f32 %v2489_v59, %v2329_v55  ;;  %v2331_v56 = vpop.f32.mrb[3].mxu0  ;;  %v2493_v21 = vadd.f32 %v2484_v19, %v2368_v13  ;;  %v2370_v53 = vpop.f32.mrb[1].mxu1 }
 0x1e6   :  { %v2508_v10 = vmax.f32 %v2492_v41, 0.0  ;;  %v2500_v7 = vadd.f32 %v2489_v59, %v2331_v56  ;;  %v2494_v15 = vadd.f32 %v2484_v19, %v2370_v53  ;;  %v2372_v49 = vpop.f32.mrb[2].mxu1 }
 0x1e7   :  { %v2515_v16 = vmax.f32 %v2499_v17, 0.0  ;;  %v2509_v42 = vmax.f32 %v2493_v21, 0.0  ;;  %v2501_v33 = vadd.f32 %v2489_v59, %v2372_v49  ;;  %v2374_v14 = vpop.f32.mrb[3].mxu1 }
 0x1e8   :  { %v2516_v30 = vmax.f32 %v2500_v7, 0.0  ;;  %v2523_v25 = vadd.f32 %v2508_v10, %v2507_v1  ;;  %v2510_v5 = vmax.f32 %v2494_v15, 0.0  ;;  %v2502_v32 = vadd.f32 %v2489_v59, %v2374_v14 }
 0x1e9   :  { %v2517_v45 = vmax.f32 %v2501_v33, 0.0 }
 0x1ea   :  { %2524 = vadd.xlane.f32.xlu1 %v2523_v25  ;;  %v2411_v40 = vpop.f32.mrb[4].mxu0  ;;  %v2526_v51 = vadd.f32 %v2516_v30, %v2515_v16  ;;  %v2518_v57 = vmax.f32 %v2502_v32, 0.0  ;;  %v2532_v23 = vadd.f32 %v2510_v5, %v2509_v42 }
 0x1eb   :  { %v2495_v48 = vadd.f32 %v2484_v19, %v2411_v40  ;;  %v2413_v24 = vpop.f32.mrb[5].mxu0 }
 0x1ec   :  { %v2496_v58 = vadd.f32 %v2484_v19, %v2413_v24  ;;  %v2415_v8 = vpop.f32.mrb[6].mxu0  ;;  %2533 = vadd.xlane.f32.xlu0 %v2532_v23  ;;  %v2454_v43 = vpop.f32.mrb[4].mxu1  ;;  %v2535_v60 = vadd.f32 %v2518_v57, %v2517_v45 }
 0x1ed   :  { %v2511_v61 = vmax.f32 %v2495_v48, 0.0  ;;  %v2503_v62 = vadd.f32 %v2489_v59, %v2415_v8  ;;  %v2417_v46 = vpop.f32.mrb[7].mxu0  ;;  %v2497_v47 = vadd.f32 %v2484_v19, %v2454_v43  ;;  %v2456_v39 = vpop.f32.mrb[5].mxu1 }
 0x1ee   :  { %v2512_v0 = vmax.f32 %v2496_v58, 0.0  ;;  %v2504_v52 = vadd.f32 %v2489_v59, %v2417_v46  ;;  %v2498_v9 = vadd.f32 %v2484_v19, %v2456_v39  ;;  %v2458_v50 = vpop.f32.mrb[6].mxu1  ;;  %2536 = vadd.xlane.f32.xlu1 %v2535_v60 }
 0x1ef   :  { %v2519_v38 = vmax.f32 %v2503_v62, 0.0  ;;  %v2513_v27 = vmax.f32 %v2497_v47, 0.0  ;;  %v2505_v36 = vadd.f32 %v2489_v59, %v2458_v50  ;;  %v2460_v26 = vpop.f32.mrb[7].mxu1 }
 0x1f0   :  { %v2520_v54 = vmax.f32 %v2504_v52, 0.0  ;;  %v2543_v22 = vadd.f32 %v2512_v0, %v2511_v61  ;;  %v2514_v12 = vmax.f32 %v2498_v9, 0.0  ;;  %v2506_v28 = vadd.f32 %v2489_v59, %v2460_v26  ;;  %2527 = vadd.xlane.f32.xlu0 %v2526_v51 }
 0x1f1   :  { %v2521_v31 = vmax.f32 %v2505_v36, 0.0 }
 0x1f2   :  { %v2546_v63 = vadd.f32 %v2520_v54, %v2519_v38  ;;  %v2522_v34 = vmax.f32 %v2506_v28, 0.0  ;;  %v2554_v6 = vadd.f32 %v2514_v12, %v2513_v27 }
 0x1f4   :  { %2547 = vadd.xlane.f32.xlu1 %v2546_v63  ;;  %2544 = vadd.xlane.f32.xlu0 %v2543_v22  ;;  %v2557_v3 = vadd.f32 %v2522_v34, %v2521_v31 }
 0x1f8   :  { %2558 = vadd.xlane.f32.xlu1 %v2557_v3  ;;  %2555 = vadd.xlane.f32.xlu0 %v2554_v6 }
 0x277   :  { %v2525_v19 = vpop.xlane.xlu1 %2524 }
 0x278   :  { %v2530_v4 = vsel %vm2529_vm3, %v2525_v19, 0.0 }
 0x279   :  { %v2534_v20 = vpop.xlane.xlu0 %2533 }
 0x27a   :  { %v2539_v41 = vsel %vm2538_vm5, %v2534_v20, 0.0 }
 0x27b   :  { %v2537_v59 = vpop.xlane.xlu1 %2536  ;;  %v2541_v10 = vadd.f32 %v2539_v41, %v2530_v4 }
 0x27c   :  { %v2540_v13 = vsel %vm2538_vm5, %v2537_v59, 0.0 }
 0x27d   :  { %v2528_v44 = vpop.xlane.xlu0 %2527 }
 0x27e   :  { %v2531_v17 = vsel %vm2529_vm3, %v2528_v44, 0.0 }
 0x27f   :  { %v2542_v7 = vadd.f32 %v2540_v13, %v2531_v17 }
 0x281   :  { %v2548_v55 = vpop.xlane.xlu1 %2547  ;;  %v2545_v1 = vpop.xlane.xlu0 %2544 }
 0x282   :  { %v2550_v56 = vsel %vm2549_vm14, %v2545_v1, 0.0  ;;  %v2551_v21 = vsel %vm2549_vm14, %v2548_v55, 0.0 }
 0x283   :  { %v2552_v16 = vadd.f32 %v2550_v56, %v2541_v10  ;;  %v2553_v30 = vadd.f32 %v2551_v21, %v2542_v7 }
 0x285   :  { %v2559_v53 = vpop.xlane.xlu1 %2558  ;;  %v2556_v15 = vpop.xlane.xlu0 %2555 }
 0x286   :  { %v2561_v49 = vsel %vm2560_vm15, %v2556_v15, 0.0  ;;  %v2562_v42 = vsel %vm2560_vm15, %v2559_v53, 0.0 }
 0x287   :  { %v2563_v33 = vadd.f32 %v2561_v49, %v2552_v16  ;;  %v2564_v25 = vadd.f32 %v2562_v42, %v2553_v30 }
 0x289   :  { %v2565_v14 = vmul.f32 0.00390625, %v2563_v33  ;;  %v2566_v5 = vmul.f32 0.00390625, %v2564_v25 }
 0x28b   :  { %2567 = vxpose.xlu0.b32.start [1/2] (short) (narrow) %v2565_v14, 8 }
 0x28f   :  { %2568 = vxpose.xlu0.b32.end [2/2] (short) (narrow) %v2566_v5, 8 }
 0x30b   :  { %v2583_v32 = vpop.trf.xlu0 }
 0x30c   :  { %2773 = vmatmul.mubr.msk.f32.vlgmr.msra.gmra.mrb[8].mxu0 %vm2608_vm13, %v2583_v32 }
 0x3df   :  { %v2678_v45 = vpop.f32.mrb[8].mxu0 }
 0x3e0   :  { %v2679_v40 = vadd.f32 %v2763_v18, %v2678_v45  ;;  %v2774_v51 = vpop.f32.mrb[9].mxu0 }
 0x3e2   :  { %v2682_v57 = vmul.f32 %v2679_v40, %v2679_v40 }
 0x3e4   :  { %v2684_v48 = vsel %vm2683_vm10, %v2682_v57, 0.0 }
 0x3e5   :  { %2685 = vadd.xlane.f32.xlu1 %v2684_v48 }
 0x472   :  { %v2686_v23 = vpop.xlane.xlu1 %2685 }
 0x473   :  { %v2687_v24 = vadd.f32 1e-12, %v2686_v23 }
 0x475   :  { %3054 = vrsqrt.f32 %v2687_v24 }
 0x47f   :  { %v3055_v58 = vpop.eup %3054 }
 0x480   :  { %v2689_v8 = vmul.f32 %v3055_v58, %v2679_v40 }
 0x482   :  { %2693 = vrot.lane.b32.xlu1 %v2689_v8, %s3070_s28  ;;  %2691 = vst.msk [vmem:[%s3983_s5] sm:$0x3] %vm2690_vm0, %v2689_v8 }
 0x4f4   :  { %v2694_v61 = vpop.permute.xlu1 %2693 }
 0x4f5   :  { %2697 = vst.msk [vmem:[%s3983_s5 - $0x2] sm:$0xc] %vm2696_vm11, %v2694_v61 }

</bundles_post_ra>
